<compile_context>
chip_gen: v5e
topology: v5e:2x2
jax: 0.10.0
libtpu: 0.0.40
codegen_flags: <defaults>
</compile_context>

<pallas_src>
import numpy as np
import jax
import jax.numpy as jnp
from jax.experimental import pallas as pl
from jax.experimental.pallas import tpu as pltpu


# ---------------- host-side constant builders (tiny, layout glue only) -------

def tap_masks(H, W):
    """m[t, 0, p] = 1 iff 3x3 tap t=(dh,dw)=(t//3-1, t%3-1) at output pixel p
    stays inside the zero-padded image (p = i*W + j)."""
    m = np.zeros((9, 1, H * W), np.float32)
    for t in range(9):
        dh, dw = t // 3 - 1, t % 3 - 1
        for i in range(H):
            for j in range(W):
                if 0 <= i + dh < H and 0 <= j + dw < W:
                    m[t, 0, i * W + j] = 1.0
    return m


def pool_selectors(H, W):
    """h(C,HW) @ S[k] picks element k of every 2x2 window; max over k == maxpool."""
    Ho, Wo = H // 2, W // 2
    S = np.zeros((4, H * W, Ho * Wo), np.float32)
    for k, (a, b) in enumerate(((0, 0), (0, 1), (1, 0), (1, 1))):
        for io in range(Ho):
            for jo in range(Wo):
                S[k, (2 * io + a) * W + (2 * jo + b), io * Wo + jo] = 1.0
    return S


def place_matrices(H, W):
    """y(C,HW) @ P[t] scatters y into a (C, 2H*2W) map at sub-pixel
    (kh, kw) = (t//2, t%2) — the kernel-2 / stride-2 transposed-conv layout."""
    P = np.zeros((4, H * W, 4 * H * W), np.float32)
    for t, (kh, kw) in enumerate(((0, 0), (0, 1), (1, 0), (1, 1))):
        for i in range(H):
            for j in range(W):
                P[t, i * W + j, (2 * i + kh) * (2 * W) + (2 * j + kw)] = 1.0
    return P


# ---------------------------- Pallas kernel ----------------------------------

def make_autoencoder_kernel(H, W):
    W1c, W2c = W, W // 2   # row stride (in flattened lanes) per conv layer

    def lane_shift(h, off):
        """out[:, p] = h[:, (p + off) % n]   (circular; wrap zeroed by masks)."""
        n = h.shape[1]
        k = off % n
        if k == 0:
            return h
        return jnp.concatenate([h[:, k:], h[:, :k]], axis=1)

    def conv3x3_bias_relu(h, w_ref, b_ref, m_ref, Wc):
        # h: (Cin, n) f32; w_ref: (Cout, 9*Cin); m_ref: (9, 1, n) border masks
        pieces = []
        for t in range(9):                       # taps in (kh, kw) order
            dh, dw = t // 3 - 1, t % 3 - 1
            off = dh * Wc + dw
            if off == 0:
                pieces.append(h)                 # centre tap: no shift, no mask
            else:
                # shifted[p] = h[p + off], zeroed where the tap falls off-image
                pieces.append(lane_shift(h, off) * m_ref[t])
        stacked = jnp.concatenate(pieces, axis=0)          # (9*Cin, n) im2col
        out = jnp.dot(w_ref[...], stacked,
                      preferred_element_type=jnp.float32)  # single MXU matmul
        return jnp.maximum(out + b_ref[...], 0.0)

    def maxpool_2x2(h, s_ref):
        p = jnp.dot(h, s_ref[0], preferred_element_type=jnp.float32)
        for k in range(1, 4):
            p = jnp.maximum(
                p, jnp.dot(h, s_ref[k], preferred_element_type=jnp.float32))
        return p

    def tconv2x2_s2_bias(h, w_ref, b_ref, p_ref):
        acc = None
        for t in range(4):   # non-overlapping taps (stride == kernel == 2)
            y = jnp.dot(w_ref[t], h, preferred_element_type=jnp.float32)
            z = jnp.dot(y, p_ref[t], preferred_element_type=jnp.float32)
            acc = z if acc is None else acc + z
        return acc + b_ref[...]

    def kernel(x_ref, w1_ref, b1_ref, m1_ref, s1_ref,
               w2_ref, b2_ref, m2_ref, s2_ref,
               tw1_ref, tb1_ref, p1_ref,
               tw2_ref, tb2_ref, p2_ref, o_ref):
        h = x_ref[0]                                              # (8,   HW)
        h = conv3x3_bias_relu(h, w1_ref, b1_ref, m1_ref, W1c)     # (16,  HW)
        h = maxpool_2x2(h, s1_ref)                                # (16, HW/4)
        h = conv3x3_bias_relu(h, w2_ref, b2_ref, m2_ref, W2c)     # (4,  HW/4)
        h = maxpool_2x2(h, s2_ref)                                # (4, HW/16)
        h = jnp.maximum(
            tconv2x2_s2_bias(h, tw1_ref, tb1_ref, p1_ref), 0.0)   # (16, HW/4)
        h = tconv2x2_s2_bias(h, tw2_ref, tb2_ref, p2_ref)         # (2,   HW)
        o_ref[0] = 1.0 / (1.0 + jnp.exp(-h))                      # sigmoid
    return kernel


# ------------------------------ wrapper ---------------------------------------

def autoencoder_pallas(x_nchw, params):
    w1, b1, w2, b2, tw1, tb1, tw2, tb2 = params
    N, Cin, H, W = x_nchw.shape
    assert Cin == 2 and H % 4 == 0 and W % 4 == 0
    HW = H * W
    CIN_P = 8                     # pad conv1 input channels to one sublane tile

    # NCHW -> (N, C, H*W) is a pure reshape in this layout; zero-pad channels.
    x_flat = x_nchw.reshape(N, Cin, HW)
    x_flat = jnp.pad(x_flat, ((0, 0), (0, CIN_P - Cin), (0, 0)))

    # conv weights -> im2col matrices (Cout, 9*Cin), taps in (kh, kw) order
    w1p = jnp.pad(w1, ((0, 0), (0, CIN_P - Cin), (0, 0), (0, 0)))
    w1m = jnp.transpose(w1p, (0, 2, 3, 1)).reshape(16, 9 * CIN_P)
    w2m = jnp.transpose(w2, (0, 2, 3, 1)).reshape(4, 9 * 16)
    # t-conv weights (Cin, Cout, kh, kw) -> per-tap (Cout, Cin)
    tw1m = jnp.transpose(tw1, (2, 3, 1, 0)).reshape(4, 16, 4)
    tw2m = jnp.transpose(tw2, (2, 3, 1, 0)).reshape(4, 2, 16)
    b1r, b2r = b1.reshape(16, 1), b2.reshape(4, 1)
    tb1r, tb2r = tb1.reshape(16, 1), tb2.reshape(2, 1)

    m1 = jnp.asarray(tap_masks(H, W))                       # (9, 1, HW)
    m2 = jnp.asarray(tap_masks(H // 2, W // 2))             # (9, 1, HW/4)
    s1 = jnp.asarray(pool_selectors(H, W))                  # (4, HW,   HW/4)
    s2 = jnp.asarray(pool_selectors(H // 2, W // 2))        # (4, HW/4, HW/16)
    p1 = jnp.asarray(place_matrices(H // 4, W // 4))        # (4, HW/16, HW/4)
    p2 = jnp.asarray(place_matrices(H // 2, W // 2))        # (4, HW/4,  HW)

    operands = (x_flat, w1m, b1r, m1, s1, w2m, b2r, m2, s2,
                tw1m, tb1r, p1, tw2m, tb2r, p2)

    def const_spec(a):
        return pl.BlockSpec(a.shape, lambda n, nd=a.ndim: (0,) * nd)

    in_specs = [pl.BlockSpec((1, CIN_P, HW), lambda n: (n, 0, 0))]
    in_specs += [const_spec(a) for a in operands[1:]]
    out_spec = pl.BlockSpec((1, 2, HW), lambda n: (n, 0, 0))

    out_flat = pl.pallas_call(
        make_autoencoder_kernel(H, W),
        out_shape=jax.ShapeDtypeStruct((N, 2, HW), jnp.float32),
        grid=(N,),
        in_specs=in_specs,
        out_specs=out_spec,
        compiler_params=pltpu.CompilerParams(
            dimension_semantics=("parallel",)),   # batch shards across TCs
    )(*operands)

    # (N, 2, H*W) -> NCHW is just a reshape in this layout.
    return out_flat.reshape(N, 2, H, W)


# ------------------------ pure-JAX reference (NCHW) ---------------------------

def autoencoder_reference(x, params):
    w1, b1, w2, b2, tw1, tb1, tw2, tb2 = params
    hp = jax.lax.Precision.HIGHEST

    def conv(h, w, b):
        y = jax.lax.conv_general_dilated(
            h, w, (1, 1), ((1, 1), (1, 1)),
            dimension_numbers=("NCHW", "OIHW", "NCHW"), precision=hp)
        return y + b[None, :, None, None]

    def pool(h):
        return jax.lax.reduce_window(h, -jnp.inf, jax.lax.max,
                                     (1, 1, 2, 2), (1, 1, 2, 2), "VALID")

    def tconv(h, w, b):
        N, Cin, H, W = h.shape
        Cout = w.shape[1]
        out = jnp.zeros((N, Cout, 2 * H, 2 * W), h.dtype)
        for kh in range(2):
            for kw in range(2):
                contrib = jnp.einsum("nchw,cd->ndhw", h, w[:, :, kh, kw],
                                     precision=hp)
                out = out.at[:, :, kh::2, kw::2].set(contrib)
        return out + b[None, :, None, None]

    h = jax.nn.relu(conv(x, w1, b1))
    h = pool(h)
    h = jax.nn.relu(conv(h, w2, b2))
    h = pool(h)
    h = jax.nn.relu(tconv(h, tw1, tb1))
    return jax.nn.sigmoid(tconv(h, tw2, tb2))


# --------------------------------- main ----------------------------------------

if __name__ == "__main__":
    key = jax.random.PRNGKey(0)
    ks = jax.random.split(key, 9)

    def uinit(k, shape, fan_in):
        bound = 1.0 / np.sqrt(fan_in)
        return jax.random.uniform(k, shape, jnp.float32, -bound, bound)

    # deterministic synthetic parameters (shapes follow the PyTorch module)
    w1 = uinit(ks[0], (16, 2, 3, 3), 2 * 9)     # conv1
    b1 = uinit(ks[1], (16,), 2 * 9)
    w2 = uinit(ks[2], (4, 16, 3, 3), 16 * 9)    # conv2
    b2 = uinit(ks[3], (4,), 16 * 9)
    tw1 = uinit(ks[4], (4, 16, 2, 2), 4 * 4)    # t_conv1 (Cin, Cout, kh, kw)
    tb1 = uinit(ks[5], (16,), 4 * 4)
    tw2 = uinit(ks[6], (16, 2, 2, 2), 16 * 4)   # t_conv2
    tb2 = uinit(ks[7], (2,), 16 * 4)
    params = (w1, b1, w2, b2, tw1, tb1, tw2, tb2)

    x = jax.random.uniform(ks[8], (2, 2, 16, 16), jnp.float32)  # NCHW

    out = jax.jit(autoencoder_pallas)(x, params)
    out = jax.block_until_ready(out)

    ref = jax.block_until_ready(autoencoder_reference(x, params))

    assert out.shape == (2, 2, 16, 16) and out.dtype == jnp.float32
    assert np.allclose(np.asarray(out), np.asarray(ref), rtol=5e-3, atol=5e-3), \
        "Pallas kernel output does not match the reference"

    print("KERNEL_OK")
</pallas_src>

<mosaic_0001>
module attributes {stable_mosaic.version = 11 : i64} {
  func.func @kernel(%arg0: i32, %arg1: memref<1x8x256xf32, #tpu.memory_space<vmem>>, %arg2: memref<16x72xf32, #tpu.memory_space<vmem>>, %arg3: memref<16x1xf32, #tpu.memory_space<vmem>>, %arg4: memref<9x1x256xf32, #tpu.memory_space<vmem>>, %arg5: memref<4x256x64xf32, #tpu.memory_space<vmem>>, %arg6: memref<4x144xf32, #tpu.memory_space<vmem>>, %arg7: memref<4x1xf32, #tpu.memory_space<vmem>>, %arg8: memref<9x1x64xf32, #tpu.memory_space<vmem>>, %arg9: memref<4x64x16xf32, #tpu.memory_space<vmem>>, %arg10: memref<4x16x4xf32, #tpu.memory_space<vmem>>, %arg11: memref<16x1xf32, #tpu.memory_space<vmem>>, %arg12: memref<4x16x64xf32, #tpu.memory_space<vmem>>, %arg13: memref<4x2x16xf32, #tpu.memory_space<vmem>>, %arg14: memref<2x1xf32, #tpu.memory_space<vmem>>, %arg15: memref<4x64x256xf32, #tpu.memory_space<vmem>>, %arg16: memref<1x2x256xf32, #tpu.memory_space<vmem>>) attributes {dimension_semantics = [#tpu.dimension_semantics<parallel>], iteration_bounds = array<i64: 2>, scalar_prefetch = 0 : i64, scratch_operands = 0 : i64, tpu.core_type = #tpu.core_type<tc>, window_params = [{transform_indices = @transform_0, window_bounds = array<i64: 1, 8, 256>}, {pipeline_mode = #tpu.pipeline_mode<synchronous>, transform_indices = @transform_1, window_bounds = array<i64: 16, 72>}, {pipeline_mode = #tpu.pipeline_mode<synchronous>, transform_indices = @transform_2, window_bounds = array<i64: 16, 1>}, {pipeline_mode = #tpu.pipeline_mode<synchronous>, transform_indices = @transform_3, window_bounds = array<i64: 9, 1, 256>}, {pipeline_mode = #tpu.pipeline_mode<synchronous>, transform_indices = @transform_4, window_bounds = array<i64: 4, 256, 64>}, {pipeline_mode = #tpu.pipeline_mode<synchronous>, transform_indices = @transform_5, window_bounds = array<i64: 4, 144>}, {pipeline_mode = #tpu.pipeline_mode<synchronous>, transform_indices = @transform_6, window_bounds = array<i64: 4, 1>}, {pipeline_mode = #tpu.pipeline_mode<synchronous>, transform_indices = @transform_7, window_bounds = array<i64: 9, 1, 64>}, {pipeline_mode = #tpu.pipeline_mode<synchronous>, transform_indices = @transform_8, window_bounds = array<i64: 4, 64, 16>}, {pipeline_mode = #tpu.pipeline_mode<synchronous>, transform_indices = @transform_9, window_bounds = array<i64: 4, 16, 4>}, {pipeline_mode = #tpu.pipeline_mode<synchronous>, transform_indices = @transform_10, window_bounds = array<i64: 16, 1>}, {pipeline_mode = #tpu.pipeline_mode<synchronous>, transform_indices = @transform_11, window_bounds = array<i64: 4, 16, 64>}, {pipeline_mode = #tpu.pipeline_mode<synchronous>, transform_indices = @transform_12, window_bounds = array<i64: 4, 2, 16>}, {pipeline_mode = #tpu.pipeline_mode<synchronous>, transform_indices = @transform_13, window_bounds = array<i64: 2, 1>}, {pipeline_mode = #tpu.pipeline_mode<synchronous>, transform_indices = @transform_14, window_bounds = array<i64: 4, 64, 256>}, {transform_indices = @transform_15, window_bounds = array<i64: 1, 2, 256>}]} {
    %c0 = arith.constant 0 : index
    %c0_0 = arith.constant 0 : index
    %c0_1 = arith.constant 0 : index
    %0 = vector.load %arg1[%c0, %c0_0, %c0_1] : memref<1x8x256xf32, #tpu.memory_space<vmem>>, vector<1x8x256xf32>
    %1 = vector.shape_cast %0 : vector<1x8x256xf32> to vector<8x256xf32>
    %2 = vector.extract_strided_slice %1 {offsets = [0, 239], sizes = [8, 17], strides = [1, 1]} : vector<8x256xf32> to vector<8x17xf32>
    %3 = vector.extract_strided_slice %1 {offsets = [0, 0], sizes = [8, 239], strides = [1, 1]} : vector<8x256xf32> to vector<8x239xf32>
    %4 = tpu.concatenate %2, %3 in 1 : vector<8x17xf32>, vector<8x239xf32> -> vector<8x256xf32>
    %c0_2 = arith.constant 0 : index
    %c0_3 = arith.constant 0 : index
    %c0_4 = arith.constant 0 : index
    %5 = vector.load %arg4[%c0_2, %c0_3, %c0_4] : memref<9x1x256xf32, #tpu.memory_space<vmem>>, vector<1x1x256xf32>
    %6 = vector.shape_cast %5 : vector<1x1x256xf32> to vector<1x256xf32>
    %7 = vector.broadcast %6 : vector<1x256xf32> to vector<8x256xf32>
    %8 = arith.mulf %4, %7 : vector<8x256xf32>
    %9 = vector.extract_strided_slice %1 {offsets = [0, 240], sizes = [8, 16], strides = [1, 1]} : vector<8x256xf32> to vector<8x16xf32>
    %10 = vector.extract_strided_slice %1 {offsets = [0, 0], sizes = [8, 240], strides = [1, 1]} : vector<8x256xf32> to vector<8x240xf32>
    %11 = tpu.concatenate %9, %10 in 1 : vector<8x16xf32>, vector<8x240xf32> -> vector<8x256xf32>
    %c1 = arith.constant 1 : index
    %c0_5 = arith.constant 0 : index
    %c0_6 = arith.constant 0 : index
    %12 = vector.load %arg4[%c1, %c0_5, %c0_6] : memref<9x1x256xf32, #tpu.memory_space<vmem>>, vector<1x1x256xf32>
    %13 = vector.shape_cast %12 : vector<1x1x256xf32> to vector<1x256xf32>
    %14 = vector.broadcast %13 : vector<1x256xf32> to vector<8x256xf32>
    %15 = arith.mulf %11, %14 : vector<8x256xf32>
    %16 = vector.extract_strided_slice %1 {offsets = [0, 241], sizes = [8, 15], strides = [1, 1]} : vector<8x256xf32> to vector<8x15xf32>
    %17 = vector.extract_strided_slice %1 {offsets = [0, 0], sizes = [8, 241], strides = [1, 1]} : vector<8x256xf32> to vector<8x241xf32>
    %18 = tpu.concatenate %16, %17 in 1 : vector<8x15xf32>, vector<8x241xf32> -> vector<8x256xf32>
    %c2 = arith.constant 2 : index
    %c0_7 = arith.constant 0 : index
    %c0_8 = arith.constant 0 : index
    %19 = vector.load %arg4[%c2, %c0_7, %c0_8] : memref<9x1x256xf32, #tpu.memory_space<vmem>>, vector<1x1x256xf32>
    %20 = vector.shape_cast %19 : vector<1x1x256xf32> to vector<1x256xf32>
    %21 = vector.broadcast %20 : vector<1x256xf32> to vector<8x256xf32>
    %22 = arith.mulf %18, %21 : vector<8x256xf32>
    %23 = vector.extract_strided_slice %1 {offsets = [0, 255], sizes = [8, 1], strides = [1, 1]} : vector<8x256xf32> to vector<8x1xf32>
    %24 = vector.extract_strided_slice %1 {offsets = [0, 0], sizes = [8, 255], strides = [1, 1]} : vector<8x256xf32> to vector<8x255xf32>
    %25 = tpu.concatenate %23, %24 in 1 : vector<8x1xf32>, vector<8x255xf32> -> vector<8x256xf32>
    %c3 = arith.constant 3 : index
    %c0_9 = arith.constant 0 : index
    %c0_10 = arith.constant 0 : index
    %26 = vector.load %arg4[%c3, %c0_9, %c0_10] : memref<9x1x256xf32, #tpu.memory_space<vmem>>, vector<1x1x256xf32>
    %27 = vector.shape_cast %26 : vector<1x1x256xf32> to vector<1x256xf32>
    %28 = vector.broadcast %27 : vector<1x256xf32> to vector<8x256xf32>
    %29 = arith.mulf %25, %28 : vector<8x256xf32>
    %30 = vector.extract_strided_slice %1 {offsets = [0, 1], sizes = [8, 255], strides = [1, 1]} : vector<8x256xf32> to vector<8x255xf32>
    %31 = vector.extract_strided_slice %1 {offsets = [0, 0], sizes = [8, 1], strides = [1, 1]} : vector<8x256xf32> to vector<8x1xf32>
    %32 = tpu.concatenate %30, %31 in 1 : vector<8x255xf32>, vector<8x1xf32> -> vector<8x256xf32>
    %c5 = arith.constant 5 : index
    %c0_11 = arith.constant 0 : index
    %c0_12 = arith.constant 0 : index
    %33 = vector.load %arg4[%c5, %c0_11, %c0_12] : memref<9x1x256xf32, #tpu.memory_space<vmem>>, vector<1x1x256xf32>
    %34 = vector.shape_cast %33 : vector<1x1x256xf32> to vector<1x256xf32>
    %35 = vector.broadcast %34 : vector<1x256xf32> to vector<8x256xf32>
    %36 = arith.mulf %32, %35 : vector<8x256xf32>
    %37 = vector.extract_strided_slice %1 {offsets = [0, 15], sizes = [8, 241], strides = [1, 1]} : vector<8x256xf32> to vector<8x241xf32>
    %38 = vector.extract_strided_slice %1 {offsets = [0, 0], sizes = [8, 15], strides = [1, 1]} : vector<8x256xf32> to vector<8x15xf32>
    %39 = tpu.concatenate %37, %38 in 1 : vector<8x241xf32>, vector<8x15xf32> -> vector<8x256xf32>
    %c6 = arith.constant 6 : index
    %c0_13 = arith.constant 0 : index
    %c0_14 = arith.constant 0 : index
    %40 = vector.load %arg4[%c6, %c0_13, %c0_14] : memref<9x1x256xf32, #tpu.memory_space<vmem>>, vector<1x1x256xf32>
    %41 = vector.shape_cast %40 : vector<1x1x256xf32> to vector<1x256xf32>
    %42 = vector.broadcast %41 : vector<1x256xf32> to vector<8x256xf32>
    %43 = arith.mulf %39, %42 : vector<8x256xf32>
    %44 = vector.extract_strided_slice %1 {offsets = [0, 16], sizes = [8, 240], strides = [1, 1]} : vector<8x256xf32> to vector<8x240xf32>
    %45 = vector.extract_strided_slice %1 {offsets = [0, 0], sizes = [8, 16], strides = [1, 1]} : vector<8x256xf32> to vector<8x16xf32>
    %46 = tpu.concatenate %44, %45 in 1 : vector<8x240xf32>, vector<8x16xf32> -> vector<8x256xf32>
    %c7 = arith.constant 7 : index
    %c0_15 = arith.constant 0 : index
    %c0_16 = arith.constant 0 : index
    %47 = vector.load %arg4[%c7, %c0_15, %c0_16] : memref<9x1x256xf32, #tpu.memory_space<vmem>>, vector<1x1x256xf32>
    %48 = vector.shape_cast %47 : vector<1x1x256xf32> to vector<1x256xf32>
    %49 = vector.broadcast %48 : vector<1x256xf32> to vector<8x256xf32>
    %50 = arith.mulf %46, %49 : vector<8x256xf32>
    %51 = vector.extract_strided_slice %1 {offsets = [0, 17], sizes = [8, 239], strides = [1, 1]} : vector<8x256xf32> to vector<8x239xf32>
    %52 = vector.extract_strided_slice %1 {offsets = [0, 0], sizes = [8, 17], strides = [1, 1]} : vector<8x256xf32> to vector<8x17xf32>
    %53 = tpu.concatenate %51, %52 in 1 : vector<8x239xf32>, vector<8x17xf32> -> vector<8x256xf32>
    %c8 = arith.constant 8 : index
    %c0_17 = arith.constant 0 : index
    %c0_18 = arith.constant 0 : index
    %54 = vector.load %arg4[%c8, %c0_17, %c0_18] : memref<9x1x256xf32, #tpu.memory_space<vmem>>, vector<1x1x256xf32>
    %55 = vector.shape_cast %54 : vector<1x1x256xf32> to vector<1x256xf32>
    %56 = vector.broadcast %55 : vector<1x256xf32> to vector<8x256xf32>
    %57 = arith.mulf %53, %56 : vector<8x256xf32>
    %58 = tpu.concatenate %8, %15, %22, %29, %1, %36, %43, %50, %57 in 0 : vector<8x256xf32>, vector<8x256xf32>, vector<8x256xf32>, vector<8x256xf32>, vector<8x256xf32>, vector<8x256xf32>, vector<8x256xf32>, vector<8x256xf32>, vector<8x256xf32> -> vector<72x256xf32>
    %c0_19 = arith.constant 0 : index
    %c0_20 = arith.constant 0 : index
    %59 = vector.load %arg2[%c0_19, %c0_20] : memref<16x72xf32, #tpu.memory_space<vmem>>, vector<16x72xf32>
    %cst = arith.constant dense<0.000000e+00> : vector<16x256xf32>
    %60 = tpu.matmul %59, %58, %cst {dimension_numbers = #tpu.dot_dimension_numbers<[1], [0], [0], [1], [0, 0, 1, 1], [], []>} : vector<16x72xf32>, vector<72x256xf32>, vector<16x256xf32> -> vector<16x256xf32>
    %c0_21 = arith.constant 0 : index
    %c0_22 = arith.constant 0 : index
    %61 = vector.load %arg3[%c0_21, %c0_22] : memref<16x1xf32, #tpu.memory_space<vmem>>, vector<16x1xf32>
    %62 = vector.broadcast %61 : vector<16x1xf32> to vector<16x256xf32>
    %63 = arith.addf %60, %62 : vector<16x256xf32>
    %cst_23 = arith.constant 0.000000e+00 : f32
    %64 = vector.broadcast %cst_23 : f32 to vector<16x256xf32>
    %65 = arith.maximumf %63, %64 : vector<16x256xf32>
    %c0_24 = arith.constant 0 : index
    %c0_25 = arith.constant 0 : index
    %c0_26 = arith.constant 0 : index
    %66 = vector.load %arg5[%c0_24, %c0_25, %c0_26] : memref<4x256x64xf32, #tpu.memory_space<vmem>>, vector<1x256x64xf32>
    %67 = vector.shape_cast %66 : vector<1x256x64xf32> to vector<256x64xf32>
    %cst_27 = arith.constant dense<0.000000e+00> : vector<16x64xf32>
    %68 = tpu.matmul %65, %67, %cst_27 {dimension_numbers = #tpu.dot_dimension_numbers<[1], [0], [0], [1], [0, 0, 1, 1], [], []>} : vector<16x256xf32>, vector<256x64xf32>, vector<16x64xf32> -> vector<16x64xf32>
    %c1_28 = arith.constant 1 : index
    %c0_29 = arith.constant 0 : index
    %c0_30 = arith.constant 0 : index
    %69 = vector.load %arg5[%c1_28, %c0_29, %c0_30] : memref<4x256x64xf32, #tpu.memory_space<vmem>>, vector<1x256x64xf32>
    %70 = vector.shape_cast %69 : vector<1x256x64xf32> to vector<256x64xf32>
    %cst_31 = arith.constant dense<0.000000e+00> : vector<16x64xf32>
    %71 = tpu.matmul %65, %70, %cst_31 {dimension_numbers = #tpu.dot_dimension_numbers<[1], [0], [0], [1], [0, 0, 1, 1], [], []>} : vector<16x256xf32>, vector<256x64xf32>, vector<16x64xf32> -> vector<16x64xf32>
    %72 = arith.maximumf %68, %71 : vector<16x64xf32>
    %c2_32 = arith.constant 2 : index
    %c0_33 = arith.constant 0 : index
    %c0_34 = arith.constant 0 : index
    %73 = vector.load %arg5[%c2_32, %c0_33, %c0_34] : memref<4x256x64xf32, #tpu.memory_space<vmem>>, vector<1x256x64xf32>
    %74 = vector.shape_cast %73 : vector<1x256x64xf32> to vector<256x64xf32>
    %cst_35 = arith.constant dense<0.000000e+00> : vector<16x64xf32>
    %75 = tpu.matmul %65, %74, %cst_35 {dimension_numbers = #tpu.dot_dimension_numbers<[1], [0], [0], [1], [0, 0, 1, 1], [], []>} : vector<16x256xf32>, vector<256x64xf32>, vector<16x64xf32> -> vector<16x64xf32>
    %76 = arith.maximumf %72, %75 : vector<16x64xf32>
    %c3_36 = arith.constant 3 : index
    %c0_37 = arith.constant 0 : index
    %c0_38 = arith.constant 0 : index
    %77 = vector.load %arg5[%c3_36, %c0_37, %c0_38] : memref<4x256x64xf32, #tpu.memory_space<vmem>>, vector<1x256x64xf32>
    %78 = vector.shape_cast %77 : vector<1x256x64xf32> to vector<256x64xf32>
    %cst_39 = arith.constant dense<0.000000e+00> : vector<16x64xf32>
    %79 = tpu.matmul %65, %78, %cst_39 {dimension_numbers = #tpu.dot_dimension_numbers<[1], [0], [0], [1], [0, 0, 1, 1], [], []>} : vector<16x256xf32>, vector<256x64xf32>, vector<16x64xf32> -> vector<16x64xf32>
    %80 = arith.maximumf %76, %79 : vector<16x64xf32>
    %81 = vector.extract_strided_slice %80 {offsets = [0, 55], sizes = [16, 9], strides = [1, 1]} : vector<16x64xf32> to vector<16x9xf32>
    %82 = vector.extract_strided_slice %80 {offsets = [0, 0], sizes = [16, 55], strides = [1, 1]} : vector<16x64xf32> to vector<16x55xf32>
    %83 = tpu.concatenate %81, %82 in 1 : vector<16x9xf32>, vector<16x55xf32> -> vector<16x64xf32>
    %c0_40 = arith.constant 0 : index
    %c0_41 = arith.constant 0 : index
    %c0_42 = arith.constant 0 : index
    %84 = vector.load %arg8[%c0_40, %c0_41, %c0_42] : memref<9x1x64xf32, #tpu.memory_space<vmem>>, vector<1x1x64xf32>
    %85 = vector.shape_cast %84 : vector<1x1x64xf32> to vector<1x64xf32>
    %86 = vector.broadcast %85 : vector<1x64xf32> to vector<16x64xf32>
    %87 = arith.mulf %83, %86 : vector<16x64xf32>
    %88 = vector.extract_strided_slice %80 {offsets = [0, 56], sizes = [16, 8], strides = [1, 1]} : vector<16x64xf32> to vector<16x8xf32>
    %89 = vector.extract_strided_slice %80 {offsets = [0, 0], sizes = [16, 56], strides = [1, 1]} : vector<16x64xf32> to vector<16x56xf32>
    %90 = tpu.concatenate %88, %89 in 1 : vector<16x8xf32>, vector<16x56xf32> -> vector<16x64xf32>
    %c1_43 = arith.constant 1 : index
    %c0_44 = arith.constant 0 : index
    %c0_45 = arith.constant 0 : index
    %91 = vector.load %arg8[%c1_43, %c0_44, %c0_45] : memref<9x1x64xf32, #tpu.memory_space<vmem>>, vector<1x1x64xf32>
    %92 = vector.shape_cast %91 : vector<1x1x64xf32> to vector<1x64xf32>
    %93 = vector.broadcast %92 : vector<1x64xf32> to vector<16x64xf32>
    %94 = arith.mulf %90, %93 : vector<16x64xf32>
    %95 = vector.extract_strided_slice %80 {offsets = [0, 57], sizes = [16, 7], strides = [1, 1]} : vector<16x64xf32> to vector<16x7xf32>
    %96 = vector.extract_strided_slice %80 {offsets = [0, 0], sizes = [16, 57], strides = [1, 1]} : vector<16x64xf32> to vector<16x57xf32>
    %97 = tpu.concatenate %95, %96 in 1 : vector<16x7xf32>, vector<16x57xf32> -> vector<16x64xf32>
    %c2_46 = arith.constant 2 : index
    %c0_47 = arith.constant 0 : index
    %c0_48 = arith.constant 0 : index
    %98 = vector.load %arg8[%c2_46, %c0_47, %c0_48] : memref<9x1x64xf32, #tpu.memory_space<vmem>>, vector<1x1x64xf32>
    %99 = vector.shape_cast %98 : vector<1x1x64xf32> to vector<1x64xf32>
    %100 = vector.broadcast %99 : vector<1x64xf32> to vector<16x64xf32>
    %101 = arith.mulf %97, %100 : vector<16x64xf32>
    %102 = vector.extract_strided_slice %80 {offsets = [0, 63], sizes = [16, 1], strides = [1, 1]} : vector<16x64xf32> to vector<16x1xf32>
    %103 = vector.extract_strided_slice %80 {offsets = [0, 0], sizes = [16, 63], strides = [1, 1]} : vector<16x64xf32> to vector<16x63xf32>
    %104 = tpu.concatenate %102, %103 in 1 : vector<16x1xf32>, vector<16x63xf32> -> vector<16x64xf32>
    %c3_49 = arith.constant 3 : index
    %c0_50 = arith.constant 0 : index
    %c0_51 = arith.constant 0 : index
    %105 = vector.load %arg8[%c3_49, %c0_50, %c0_51] : memref<9x1x64xf32, #tpu.memory_space<vmem>>, vector<1x1x64xf32>
    %106 = vector.shape_cast %105 : vector<1x1x64xf32> to vector<1x64xf32>
    %107 = vector.broadcast %106 : vector<1x64xf32> to vector<16x64xf32>
    %108 = arith.mulf %104, %107 : vector<16x64xf32>
    %109 = vector.extract_strided_slice %80 {offsets = [0, 1], sizes = [16, 63], strides = [1, 1]} : vector<16x64xf32> to vector<16x63xf32>
    %110 = vector.extract_strided_slice %80 {offsets = [0, 0], sizes = [16, 1], strides = [1, 1]} : vector<16x64xf32> to vector<16x1xf32>
    %111 = tpu.concatenate %109, %110 in 1 : vector<16x63xf32>, vector<16x1xf32> -> vector<16x64xf32>
    %c5_52 = arith.constant 5 : index
    %c0_53 = arith.constant 0 : index
    %c0_54 = arith.constant 0 : index
    %112 = vector.load %arg8[%c5_52, %c0_53, %c0_54] : memref<9x1x64xf32, #tpu.memory_space<vmem>>, vector<1x1x64xf32>
    %113 = vector.shape_cast %112 : vector<1x1x64xf32> to vector<1x64xf32>
    %114 = vector.broadcast %113 : vector<1x64xf32> to vector<16x64xf32>
    %115 = arith.mulf %111, %114 : vector<16x64xf32>
    %116 = vector.extract_strided_slice %80 {offsets = [0, 7], sizes = [16, 57], strides = [1, 1]} : vector<16x64xf32> to vector<16x57xf32>
    %117 = vector.extract_strided_slice %80 {offsets = [0, 0], sizes = [16, 7], strides = [1, 1]} : vector<16x64xf32> to vector<16x7xf32>
    %118 = tpu.concatenate %116, %117 in 1 : vector<16x57xf32>, vector<16x7xf32> -> vector<16x64xf32>
    %c6_55 = arith.constant 6 : index
    %c0_56 = arith.constant 0 : index
    %c0_57 = arith.constant 0 : index
    %119 = vector.load %arg8[%c6_55, %c0_56, %c0_57] : memref<9x1x64xf32, #tpu.memory_space<vmem>>, vector<1x1x64xf32>
    %120 = vector.shape_cast %119 : vector<1x1x64xf32> to vector<1x64xf32>
    %121 = vector.broadcast %120 : vector<1x64xf32> to vector<16x64xf32>
    %122 = arith.mulf %118, %121 : vector<16x64xf32>
    %123 = vector.extract_strided_slice %80 {offsets = [0, 8], sizes = [16, 56], strides = [1, 1]} : vector<16x64xf32> to vector<16x56xf32>
    %124 = vector.extract_strided_slice %80 {offsets = [0, 0], sizes = [16, 8], strides = [1, 1]} : vector<16x64xf32> to vector<16x8xf32>
    %125 = tpu.concatenate %123, %124 in 1 : vector<16x56xf32>, vector<16x8xf32> -> vector<16x64xf32>
    %c7_58 = arith.constant 7 : index
    %c0_59 = arith.constant 0 : index
    %c0_60 = arith.constant 0 : index
    %126 = vector.load %arg8[%c7_58, %c0_59, %c0_60] : memref<9x1x64xf32, #tpu.memory_space<vmem>>, vector<1x1x64xf32>
    %127 = vector.shape_cast %126 : vector<1x1x64xf32> to vector<1x64xf32>
    %128 = vector.broadcast %127 : vector<1x64xf32> to vector<16x64xf32>
    %129 = arith.mulf %125, %128 : vector<16x64xf32>
    %130 = vector.extract_strided_slice %80 {offsets = [0, 9], sizes = [16, 55], strides = [1, 1]} : vector<16x64xf32> to vector<16x55xf32>
    %131 = vector.extract_strided_slice %80 {offsets = [0, 0], sizes = [16, 9], strides = [1, 1]} : vector<16x64xf32> to vector<16x9xf32>
    %132 = tpu.concatenate %130, %131 in 1 : vector<16x55xf32>, vector<16x9xf32> -> vector<16x64xf32>
    %c8_61 = arith.constant 8 : index
    %c0_62 = arith.constant 0 : index
    %c0_63 = arith.constant 0 : index
    %133 = vector.load %arg8[%c8_61, %c0_62, %c0_63] : memref<9x1x64xf32, #tpu.memory_space<vmem>>, vector<1x1x64xf32>
    %134 = vector.shape_cast %133 : vector<1x1x64xf32> to vector<1x64xf32>
    %135 = vector.broadcast %134 : vector<1x64xf32> to vector<16x64xf32>
    %136 = arith.mulf %132, %135 : vector<16x64xf32>
    %137 = tpu.concatenate %87, %94, %101, %108, %80, %115, %122, %129, %136 in 0 : vector<16x64xf32>, vector<16x64xf32>, vector<16x64xf32>, vector<16x64xf32>, vector<16x64xf32>, vector<16x64xf32>, vector<16x64xf32>, vector<16x64xf32>, vector<16x64xf32> -> vector<144x64xf32>
    %c0_64 = arith.constant 0 : index
    %c0_65 = arith.constant 0 : index
    %138 = vector.load %arg6[%c0_64, %c0_65] : memref<4x144xf32, #tpu.memory_space<vmem>>, vector<4x144xf32>
    %cst_66 = arith.constant dense<0.000000e+00> : vector<4x64xf32>
    %139 = tpu.matmul %138, %137, %cst_66 {dimension_numbers = #tpu.dot_dimension_numbers<[1], [0], [0], [1], [0, 0, 1, 1], [], []>} : vector<4x144xf32>, vector<144x64xf32>, vector<4x64xf32> -> vector<4x64xf32>
    %c0_67 = arith.constant 0 : index
    %c0_68 = arith.constant 0 : index
    %140 = vector.load %arg7[%c0_67, %c0_68] : memref<4x1xf32, #tpu.memory_space<vmem>>, vector<4x1xf32>
    %141 = vector.broadcast %140 : vector<4x1xf32> to vector<4x64xf32>
    %142 = arith.addf %139, %141 : vector<4x64xf32>
    %cst_69 = arith.constant 0.000000e+00 : f32
    %143 = vector.broadcast %cst_69 : f32 to vector<4x64xf32>
    %144 = arith.maximumf %142, %143 : vector<4x64xf32>
    %c0_70 = arith.constant 0 : index
    %c0_71 = arith.constant 0 : index
    %c0_72 = arith.constant 0 : index
    %145 = vector.load %arg9[%c0_70, %c0_71, %c0_72] : memref<4x64x16xf32, #tpu.memory_space<vmem>>, vector<1x64x16xf32>
    %146 = vector.shape_cast %145 : vector<1x64x16xf32> to vector<64x16xf32>
    %cst_73 = arith.constant dense<0.000000e+00> : vector<4x16xf32>
    %147 = tpu.matmul %144, %146, %cst_73 {dimension_numbers = #tpu.dot_dimension_numbers<[1], [0], [0], [1], [0, 0, 1, 1], [], []>} : vector<4x64xf32>, vector<64x16xf32>, vector<4x16xf32> -> vector<4x16xf32>
    %c1_74 = arith.constant 1 : index
    %c0_75 = arith.constant 0 : index
    %c0_76 = arith.constant 0 : index
    %148 = vector.load %arg9[%c1_74, %c0_75, %c0_76] : memref<4x64x16xf32, #tpu.memory_space<vmem>>, vector<1x64x16xf32>
    %149 = vector.shape_cast %148 : vector<1x64x16xf32> to vector<64x16xf32>
    %cst_77 = arith.constant dense<0.000000e+00> : vector<4x16xf32>
    %150 = tpu.matmul %144, %149, %cst_77 {dimension_numbers = #tpu.dot_dimension_numbers<[1], [0], [0], [1], [0, 0, 1, 1], [], []>} : vector<4x64xf32>, vector<64x16xf32>, vector<4x16xf32> -> vector<4x16xf32>
    %151 = arith.maximumf %147, %150 : vector<4x16xf32>
    %c2_78 = arith.constant 2 : index
    %c0_79 = arith.constant 0 : index
    %c0_80 = arith.constant 0 : index
    %152 = vector.load %arg9[%c2_78, %c0_79, %c0_80] : memref<4x64x16xf32, #tpu.memory_space<vmem>>, vector<1x64x16xf32>
    %153 = vector.shape_cast %152 : vector<1x64x16xf32> to vector<64x16xf32>
    %cst_81 = arith.constant dense<0.000000e+00> : vector<4x16xf32>
    %154 = tpu.matmul %144, %153, %cst_81 {dimension_numbers = #tpu.dot_dimension_numbers<[1], [0], [0], [1], [0, 0, 1, 1], [], []>} : vector<4x64xf32>, vector<64x16xf32>, vector<4x16xf32> -> vector<4x16xf32>
    %155 = arith.maximumf %151, %154 : vector<4x16xf32>
    %c3_82 = arith.constant 3 : index
    %c0_83 = arith.constant 0 : index
    %c0_84 = arith.constant 0 : index
    %156 = vector.load %arg9[%c3_82, %c0_83, %c0_84] : memref<4x64x16xf32, #tpu.memory_space<vmem>>, vector<1x64x16xf32>
    %157 = vector.shape_cast %156 : vector<1x64x16xf32> to vector<64x16xf32>
    %cst_85 = arith.constant dense<0.000000e+00> : vector<4x16xf32>
    %158 = tpu.matmul %144, %157, %cst_85 {dimension_numbers = #tpu.dot_dimension_numbers<[1], [0], [0], [1], [0, 0, 1, 1], [], []>} : vector<4x64xf32>, vector<64x16xf32>, vector<4x16xf32> -> vector<4x16xf32>
    %159 = arith.maximumf %155, %158 : vector<4x16xf32>
    %c0_86 = arith.constant 0 : index
    %c0_87 = arith.constant 0 : index
    %c0_88 = arith.constant 0 : index
    %160 = vector.load %arg10[%c0_86, %c0_87, %c0_88] : memref<4x16x4xf32, #tpu.memory_space<vmem>>, vector<1x16x4xf32>
    %161 = vector.shape_cast %160 : vector<1x16x4xf32> to vector<16x4xf32>
    %cst_89 = arith.constant dense<0.000000e+00> : vector<16x16xf32>
    %162 = tpu.matmul %161, %159, %cst_89 {dimension_numbers = #tpu.dot_dimension_numbers<[1], [0], [0], [1], [0, 0, 1, 1], [], []>} : vector<16x4xf32>, vector<4x16xf32>, vector<16x16xf32> -> vector<16x16xf32>
    %c0_90 = arith.constant 0 : index
    %c0_91 = arith.constant 0 : index
    %c0_92 = arith.constant 0 : index
    %163 = vector.load %arg12[%c0_90, %c0_91, %c0_92] : memref<4x16x64xf32, #tpu.memory_space<vmem>>, vector<1x16x64xf32>
    %164 = vector.shape_cast %163 : vector<1x16x64xf32> to vector<16x64xf32>
    %cst_93 = arith.constant dense<0.000000e+00> : vector<16x64xf32>
    %165 = tpu.matmul %162, %164, %cst_93 {dimension_numbers = #tpu.dot_dimension_numbers<[1], [0], [0], [1], [0, 0, 1, 1], [], []>} : vector<16x16xf32>, vector<16x64xf32>, vector<16x64xf32> -> vector<16x64xf32>
    %c1_94 = arith.constant 1 : index
    %c0_95 = arith.constant 0 : index
    %c0_96 = arith.constant 0 : index
    %166 = vector.load %arg10[%c1_94, %c0_95, %c0_96] : memref<4x16x4xf32, #tpu.memory_space<vmem>>, vector<1x16x4xf32>
    %167 = vector.shape_cast %166 : vector<1x16x4xf32> to vector<16x4xf32>
    %cst_97 = arith.constant dense<0.000000e+00> : vector<16x16xf32>
    %168 = tpu.matmul %167, %159, %cst_97 {dimension_numbers = #tpu.dot_dimension_numbers<[1], [0], [0], [1], [0, 0, 1, 1], [], []>} : vector<16x4xf32>, vector<4x16xf32>, vector<16x16xf32> -> vector<16x16xf32>
    %c1_98 = arith.constant 1 : index
    %c0_99 = arith.constant 0 : index
    %c0_100 = arith.constant 0 : index
    %169 = vector.load %arg12[%c1_98, %c0_99, %c0_100] : memref<4x16x64xf32, #tpu.memory_space<vmem>>, vector<1x16x64xf32>
    %170 = vector.shape_cast %169 : vector<1x16x64xf32> to vector<16x64xf32>
    %cst_101 = arith.constant dense<0.000000e+00> : vector<16x64xf32>
    %171 = tpu.matmul %168, %170, %cst_101 {dimension_numbers = #tpu.dot_dimension_numbers<[1], [0], [0], [1], [0, 0, 1, 1], [], []>} : vector<16x16xf32>, vector<16x64xf32>, vector<16x64xf32> -> vector<16x64xf32>
    %172 = arith.addf %165, %171 : vector<16x64xf32>
    %c2_102 = arith.constant 2 : index
    %c0_103 = arith.constant 0 : index
    %c0_104 = arith.constant 0 : index
    %173 = vector.load %arg10[%c2_102, %c0_103, %c0_104] : memref<4x16x4xf32, #tpu.memory_space<vmem>>, vector<1x16x4xf32>
    %174 = vector.shape_cast %173 : vector<1x16x4xf32> to vector<16x4xf32>
    %cst_105 = arith.constant dense<0.000000e+00> : vector<16x16xf32>
    %175 = tpu.matmul %174, %159, %cst_105 {dimension_numbers = #tpu.dot_dimension_numbers<[1], [0], [0], [1], [0, 0, 1, 1], [], []>} : vector<16x4xf32>, vector<4x16xf32>, vector<16x16xf32> -> vector<16x16xf32>
    %c2_106 = arith.constant 2 : index
    %c0_107 = arith.constant 0 : index
    %c0_108 = arith.constant 0 : index
    %176 = vector.load %arg12[%c2_106, %c0_107, %c0_108] : memref<4x16x64xf32, #tpu.memory_space<vmem>>, vector<1x16x64xf32>
    %177 = vector.shape_cast %176 : vector<1x16x64xf32> to vector<16x64xf32>
    %cst_109 = arith.constant dense<0.000000e+00> : vector<16x64xf32>
    %178 = tpu.matmul %175, %177, %cst_109 {dimension_numbers = #tpu.dot_dimension_numbers<[1], [0], [0], [1], [0, 0, 1, 1], [], []>} : vector<16x16xf32>, vector<16x64xf32>, vector<16x64xf32> -> vector<16x64xf32>
    %179 = arith.addf %172, %178 : vector<16x64xf32>
    %c3_110 = arith.constant 3 : index
    %c0_111 = arith.constant 0 : index
    %c0_112 = arith.constant 0 : index
    %180 = vector.load %arg10[%c3_110, %c0_111, %c0_112] : memref<4x16x4xf32, #tpu.memory_space<vmem>>, vector<1x16x4xf32>
    %181 = vector.shape_cast %180 : vector<1x16x4xf32> to vector<16x4xf32>
    %cst_113 = arith.constant dense<0.000000e+00> : vector<16x16xf32>
    %182 = tpu.matmul %181, %159, %cst_113 {dimension_numbers = #tpu.dot_dimension_numbers<[1], [0], [0], [1], [0, 0, 1, 1], [], []>} : vector<16x4xf32>, vector<4x16xf32>, vector<16x16xf32> -> vector<16x16xf32>
    %c3_114 = arith.constant 3 : index
    %c0_115 = arith.constant 0 : index
    %c0_116 = arith.constant 0 : index
    %183 = vector.load %arg12[%c3_114, %c0_115, %c0_116] : memref<4x16x64xf32, #tpu.memory_space<vmem>>, vector<1x16x64xf32>
    %184 = vector.shape_cast %183 : vector<1x16x64xf32> to vector<16x64xf32>
    %cst_117 = arith.constant dense<0.000000e+00> : vector<16x64xf32>
    %185 = tpu.matmul %182, %184, %cst_117 {dimension_numbers = #tpu.dot_dimension_numbers<[1], [0], [0], [1], [0, 0, 1, 1], [], []>} : vector<16x16xf32>, vector<16x64xf32>, vector<16x64xf32> -> vector<16x64xf32>
    %186 = arith.addf %179, %185 : vector<16x64xf32>
    %c0_118 = arith.constant 0 : index
    %c0_119 = arith.constant 0 : index
    %187 = vector.load %arg11[%c0_118, %c0_119] : memref<16x1xf32, #tpu.memory_space<vmem>>, vector<16x1xf32>
    %188 = vector.broadcast %187 : vector<16x1xf32> to vector<16x64xf32>
    %189 = arith.addf %186, %188 : vector<16x64xf32>
    %cst_120 = arith.constant 0.000000e+00 : f32
    %190 = vector.broadcast %cst_120 : f32 to vector<16x64xf32>
    %191 = arith.maximumf %189, %190 : vector<16x64xf32>
    %c0_121 = arith.constant 0 : index
    %c0_122 = arith.constant 0 : index
    %c0_123 = arith.constant 0 : index
    %192 = vector.load %arg13[%c0_121, %c0_122, %c0_123] : memref<4x2x16xf32, #tpu.memory_space<vmem>>, vector<1x2x16xf32>
    %193 = vector.shape_cast %192 : vector<1x2x16xf32> to vector<2x16xf32>
    %cst_124 = arith.constant dense<0.000000e+00> : vector<2x64xf32>
    %194 = tpu.matmul %193, %191, %cst_124 {dimension_numbers = #tpu.dot_dimension_numbers<[1], [0], [0], [1], [0, 0, 1, 1], [], []>} : vector<2x16xf32>, vector<16x64xf32>, vector<2x64xf32> -> vector<2x64xf32>
    %c0_125 = arith.constant 0 : index
    %c0_126 = arith.constant 0 : index
    %c0_127 = arith.constant 0 : index
    %195 = vector.load %arg15[%c0_125, %c0_126, %c0_127] : memref<4x64x256xf32, #tpu.memory_space<vmem>>, vector<1x64x256xf32>
    %196 = vector.shape_cast %195 : vector<1x64x256xf32> to vector<64x256xf32>
    %cst_128 = arith.constant dense<0.000000e+00> : vector<2x256xf32>
    %197 = tpu.matmul %194, %196, %cst_128 {dimension_numbers = #tpu.dot_dimension_numbers<[1], [0], [0], [1], [0, 0, 1, 1], [], []>} : vector<2x64xf32>, vector<64x256xf32>, vector<2x256xf32> -> vector<2x256xf32>
    %c1_129 = arith.constant 1 : index
    %c0_130 = arith.constant 0 : index
    %c0_131 = arith.constant 0 : index
    %198 = vector.load %arg13[%c1_129, %c0_130, %c0_131] : memref<4x2x16xf32, #tpu.memory_space<vmem>>, vector<1x2x16xf32>
    %199 = vector.shape_cast %198 : vector<1x2x16xf32> to vector<2x16xf32>
    %cst_132 = arith.constant dense<0.000000e+00> : vector<2x64xf32>
    %200 = tpu.matmul %199, %191, %cst_132 {dimension_numbers = #tpu.dot_dimension_numbers<[1], [0], [0], [1], [0, 0, 1, 1], [], []>} : vector<2x16xf32>, vector<16x64xf32>, vector<2x64xf32> -> vector<2x64xf32>
    %c1_133 = arith.constant 1 : index
    %c0_134 = arith.constant 0 : index
    %c0_135 = arith.constant 0 : index
    %201 = vector.load %arg15[%c1_133, %c0_134, %c0_135] : memref<4x64x256xf32, #tpu.memory_space<vmem>>, vector<1x64x256xf32>
    %202 = vector.shape_cast %201 : vector<1x64x256xf32> to vector<64x256xf32>
    %cst_136 = arith.constant dense<0.000000e+00> : vector<2x256xf32>
    %203 = tpu.matmul %200, %202, %cst_136 {dimension_numbers = #tpu.dot_dimension_numbers<[1], [0], [0], [1], [0, 0, 1, 1], [], []>} : vector<2x64xf32>, vector<64x256xf32>, vector<2x256xf32> -> vector<2x256xf32>
    %204 = arith.addf %197, %203 : vector<2x256xf32>
    %c2_137 = arith.constant 2 : index
    %c0_138 = arith.constant 0 : index
    %c0_139 = arith.constant 0 : index
    %205 = vector.load %arg13[%c2_137, %c0_138, %c0_139] : memref<4x2x16xf32, #tpu.memory_space<vmem>>, vector<1x2x16xf32>
    %206 = vector.shape_cast %205 : vector<1x2x16xf32> to vector<2x16xf32>
    %cst_140 = arith.constant dense<0.000000e+00> : vector<2x64xf32>
    %207 = tpu.matmul %206, %191, %cst_140 {dimension_numbers = #tpu.dot_dimension_numbers<[1], [0], [0], [1], [0, 0, 1, 1], [], []>} : vector<2x16xf32>, vector<16x64xf32>, vector<2x64xf32> -> vector<2x64xf32>
    %c2_141 = arith.constant 2 : index
    %c0_142 = arith.constant 0 : index
    %c0_143 = arith.constant 0 : index
    %208 = vector.load %arg15[%c2_141, %c0_142, %c0_143] : memref<4x64x256xf32, #tpu.memory_space<vmem>>, vector<1x64x256xf32>
    %209 = vector.shape_cast %208 : vector<1x64x256xf32> to vector<64x256xf32>
    %cst_144 = arith.constant dense<0.000000e+00> : vector<2x256xf32>
    %210 = tpu.matmul %207, %209, %cst_144 {dimension_numbers = #tpu.dot_dimension_numbers<[1], [0], [0], [1], [0, 0, 1, 1], [], []>} : vector<2x64xf32>, vector<64x256xf32>, vector<2x256xf32> -> vector<2x256xf32>
    %211 = arith.addf %204, %210 : vector<2x256xf32>
    %c3_145 = arith.constant 3 : index
    %c0_146 = arith.constant 0 : index
    %c0_147 = arith.constant 0 : index
    %212 = vector.load %arg13[%c3_145, %c0_146, %c0_147] : memref<4x2x16xf32, #tpu.memory_space<vmem>>, vector<1x2x16xf32>
    %213 = vector.shape_cast %212 : vector<1x2x16xf32> to vector<2x16xf32>
    %cst_148 = arith.constant dense<0.000000e+00> : vector<2x64xf32>
    %214 = tpu.matmul %213, %191, %cst_148 {dimension_numbers = #tpu.dot_dimension_numbers<[1], [0], [0], [1], [0, 0, 1, 1], [], []>} : vector<2x16xf32>, vector<16x64xf32>, vector<2x64xf32> -> vector<2x64xf32>
    %c3_149 = arith.constant 3 : index
    %c0_150 = arith.constant 0 : index
    %c0_151 = arith.constant 0 : index
    %215 = vector.load %arg15[%c3_149, %c0_150, %c0_151] : memref<4x64x256xf32, #tpu.memory_space<vmem>>, vector<1x64x256xf32>
    %216 = vector.shape_cast %215 : vector<1x64x256xf32> to vector<64x256xf32>
    %cst_152 = arith.constant dense<0.000000e+00> : vector<2x256xf32>
    %217 = tpu.matmul %214, %216, %cst_152 {dimension_numbers = #tpu.dot_dimension_numbers<[1], [0], [0], [1], [0, 0, 1, 1], [], []>} : vector<2x64xf32>, vector<64x256xf32>, vector<2x256xf32> -> vector<2x256xf32>
    %218 = arith.addf %211, %217 : vector<2x256xf32>
    %c0_153 = arith.constant 0 : index
    %c0_154 = arith.constant 0 : index
    %219 = vector.load %arg14[%c0_153, %c0_154] : memref<2x1xf32, #tpu.memory_space<vmem>>, vector<2x1xf32>
    %220 = vector.broadcast %219 : vector<2x1xf32> to vector<2x256xf32>
    %221 = arith.addf %218, %220 : vector<2x256xf32>
    %cst_155 = arith.constant 0.000000e+00 : f32
    %222 = vector.broadcast %cst_155 : f32 to vector<2x256xf32>
    %223 = arith.subf %222, %221 : vector<2x256xf32>
    %224 = math.exp %223 : vector<2x256xf32>
    %cst_156 = arith.constant 1.000000e+00 : f32
    %225 = vector.broadcast %cst_156 : f32 to vector<2x256xf32>
    %226 = arith.addf %225, %224 : vector<2x256xf32>
    %cst_157 = arith.constant 1.000000e+00 : f32
    %227 = vector.broadcast %cst_157 : f32 to vector<2x256xf32>
    %228 = arith.divf %227, %226 : vector<2x256xf32>
    %c0_158 = arith.constant 0 : index
    %c0_159 = arith.constant 0 : index
    %c0_160 = arith.constant 0 : index
    %229 = vector.load %arg16[%c0_158, %c0_159, %c0_160] : memref<1x2x256xf32, #tpu.memory_space<vmem>>, vector<1x2x256xf32>
    %230 = vector.shape_cast %229 : vector<1x2x256xf32> to vector<2x256xf32>
    %231 = vector.shape_cast %228 : vector<2x256xf32> to vector<1x2x256xf32>
    tpu.vector_store %arg16[%c0_158, %c0_159, %c0_160], %231 {strides = array<i32>} : memref<1x2x256xf32, #tpu.memory_space<vmem>>, vector<1x2x256xf32>,
    return
  }
  func.func @transform_0(%arg0: i32) -> (i32, i32, i32) {
    %c0_i32 = arith.constant 0 : i32
    %c0_i32_0 = arith.constant 0 : i32
    %c0_i32_1 = arith.constant 0 : i32
    return %arg0, %c0_i32, %c0_i32_0 : i32, i32, i32
  }
  func.func @transform_1(%arg0: i32) -> (i32, i32) {
    %c0_i32 = arith.constant 0 : i32
    %c0_i32_0 = arith.constant 0 : i32
    %c0_i32_1 = arith.constant 0 : i32
    return %c0_i32, %c0_i32_0 : i32, i32
  }
  func.func @transform_2(%arg0: i32) -> (i32, i32) {
    %c0_i32 = arith.constant 0 : i32
    %c0_i32_0 = arith.constant 0 : i32
    %c0_i32_1 = arith.constant 0 : i32
    return %c0_i32, %c0_i32_0 : i32, i32
  }
  func.func @transform_3(%arg0: i32) -> (i32, i32, i32) {
    %c0_i32 = arith.constant 0 : i32
    %c0_i32_0 = arith.constant 0 : i32
    %c0_i32_1 = arith.constant 0 : i32
    %c0_i32_2 = arith.constant 0 : i32
    return %c0_i32, %c0_i32_0, %c0_i32_1 : i32, i32, i32
  }
  func.func @transform_4(%arg0: i32) -> (i32, i32, i32) {
    %c0_i32 = arith.constant 0 : i32
    %c0_i32_0 = arith.constant 0 : i32
    %c0_i32_1 = arith.constant 0 : i32
    %c0_i32_2 = arith.constant 0 : i32
    return %c0_i32, %c0_i32_0, %c0_i32_1 : i32, i32, i32
  }
  func.func @transform_5(%arg0: i32) -> (i32, i32) {
    %c0_i32 = arith.constant 0 : i32
    %c0_i32_0 = arith.constant 0 : i32
    %c0_i32_1 = arith.constant 0 : i32
    return %c0_i32, %c0_i32_0 : i32, i32
  }
  func.func @transform_6(%arg0: i32) -> (i32, i32) {
    %c0_i32 = arith.constant 0 : i32
    %c0_i32_0 = arith.constant 0 : i32
    %c0_i32_1 = arith.constant 0 : i32
    return %c0_i32, %c0_i32_0 : i32, i32
  }
  func.func @transform_7(%arg0: i32) -> (i32, i32, i32) {
    %c0_i32 = arith.constant 0 : i32
    %c0_i32_0 = arith.constant 0 : i32
    %c0_i32_1 = arith.constant 0 : i32
    %c0_i32_2 = arith.constant 0 : i32
    return %c0_i32, %c0_i32_0, %c0_i32_1 : i32, i32, i32
  }
  func.func @transform_8(%arg0: i32) -> (i32, i32, i32) {
    %c0_i32 = arith.constant 0 : i32
    %c0_i32_0 = arith.constant 0 : i32
    %c0_i32_1 = arith.constant 0 : i32
    %c0_i32_2 = arith.constant 0 : i32
    return %c0_i32, %c0_i32_0, %c0_i32_1 : i32, i32, i32
  }
  func.func @transform_9(%arg0: i32) -> (i32, i32, i32) {
    %c0_i32 = arith.constant 0 : i32
    %c0_i32_0 = arith.constant 0 : i32
    %c0_i32_1 = arith.constant 0 : i32
    %c0_i32_2 = arith.constant 0 : i32
    return %c0_i32, %c0_i32_0, %c0_i32_1 : i32, i32, i32
  }
  func.func @transform_10(%arg0: i32) -> (i32, i32) {
    %c0_i32 = arith.constant 0 : i32
    %c0_i32_0 = arith.constant 0 : i32
    %c0_i32_1 = arith.constant 0 : i32
    return %c0_i32, %c0_i32_0 : i32, i32
  }
  func.func @transform_11(%arg0: i32) -> (i32, i32, i32) {
    %c0_i32 = arith.constant 0 : i32
    %c0_i32_0 = arith.constant 0 : i32
    %c0_i32_1 = arith.constant 0 : i32
    %c0_i32_2 = arith.constant 0 : i32
    return %c0_i32, %c0_i32_0, %c0_i32_1 : i32, i32, i32
  }
  func.func @transform_12(%arg0: i32) -> (i32, i32, i32) {
    %c0_i32 = arith.constant 0 : i32
    %c0_i32_0 = arith.constant 0 : i32
    %c0_i32_1 = arith.constant 0 : i32
    %c0_i32_2 = arith.constant 0 : i32
    return %c0_i32, %c0_i32_0, %c0_i32_1 : i32, i32, i32
  }
  func.func @transform_13(%arg0: i32) -> (i32, i32) {
    %c0_i32 = arith.constant 0 : i32
    %c0_i32_0 = arith.constant 0 : i32
    %c0_i32_1 = arith.constant 0 : i32
    return %c0_i32, %c0_i32_0 : i32, i32
  }
  func.func @transform_14(%arg0: i32) -> (i32, i32, i32) {
    %c0_i32 = arith.constant 0 : i32
    %c0_i32_0 = arith.constant 0 : i32
    %c0_i32_1 = arith.constant 0 : i32
    %c0_i32_2 = arith.constant 0 : i32
    return %c0_i32, %c0_i32_0, %c0_i32_1 : i32, i32, i32
  }
  func.func @transform_15(%arg0: i32) -> (i32, i32, i32) {
    %c0_i32 = arith.constant 0 : i32
    %c0_i32_0 = arith.constant 0 : i32
    %c0_i32_1 = arith.constant 0 : i32
    return %arg0, %c0_i32, %c0_i32_0 : i32, i32, i32
  }
}

</mosaic_0001>

<bundles_post_ra>
// kernel: autoencoder_pallas.1
= control target key start
LH: loop header
LB: loop body
LE: loop exit
PB: predicated region body
PF: predicated region fallthrough
CT: control target
= control target key end

     0   :  { %s2946_s0 = inlined_call_operand.vmem [shape: f32[2,8,256], index: 0, kind: input, shape index: {}]   ;;  %s2947_s1 = inlined_call_operand.vmem [shape: f32[16,72], index: 1, kind: input, shape index: {}]   ;;  %s2948_s2 = inlined_call_operand.vmem [shape: f32[16,1], index: 2, kind: input, shape index: {}]   ;;  %s2949_s3 = inlined_call_operand.vmem [shape: f32[9,1,256], index: 3, kind: input, shape index: {}]   ;;  %s2950_s4 = inlined_call_operand.hbm [shape: f32[4,256,64], index: 4, kind: input, shape index: {}]   ;;  %s2951_s5 = inlined_call_operand.vmem [shape: f32[4,144], index: 5, kind: input, shape index: {}]   ;;  %s2952_s6 = inlined_call_operand.vmem [shape: f32[4,1], index: 6, kind: input, shape index: {}]   ;;  %s2953_s7 = inlined_call_operand.vmem [shape: f32[9,1,64], index: 7, kind: input, shape index: {}]   ;;  %s2954_s8 = inlined_call_operand.hbm [shape: f32[4,64,16], index: 8, kind: input, shape index: {}]   ;;  %s2955_s9 = inlined_call_operand.vmem [shape: f32[4,16,4], index: 9, kind: input, shape index: {}]   ;;  %s2956_s10 = inlined_call_operand.vmem [shape: f32[16,1], index: 10, kind: input, shape index: {}]   ;;  %s2957_s11 = inlined_call_operand.vmem [shape: f32[4,16,64], index: 11, kind: input, shape index: {}]   ;;  %s2958_s12 = inlined_call_operand.vmem [shape: f32[4,2,16], index: 12, kind: input, shape index: {}]   ;;  %s2959_s13 = inlined_call_operand.vmem [shape: f32[2,1], index: 13, kind: input, shape index: {}]   ;;  %s2960_s14 = inlined_call_operand.hbm [shape: f32[4,64,256], index: 14, kind: input, shape index: {}]   ;;  %s2961_s15 = inlined_call_operand.vmem [shape: f32[2,2,256], index: 15, kind: output, shape index: {}]  }
   0x1   :  { %2963 = sst [smem:[#allocation10_spill]] %s2950_s4 }
   0x2   :  { %2964 = sst [smem:[#allocation11_spill]] %s2954_s8 }
   0x3   :  { %20 = vsyncpa [#allocation3], 0 }
   0x4   :  { %21 = vsyncpa [#allocation5], 0  ;;  %s2596_s18 = smov 0  }
   0x5 LB: > { %2965 = sst [smem:[#allocation9_spill]] %s2484_s18  ;;  %s2602_s19 = sadd.s32 4294967295, %s2484_s18   ;;  %s2484_s18 = sphi %s2596_s18, %s27_s18  }
   0x6   : > { %p2207_p0 = scmp.ge.s32.totalorder %s2484_s18, 1  ;;  %p378_p1 = scmp.lt.s32.totalorder %s2484_s18, 3 }
   0x7   : > { %p2317_p2 = scmp.eq.s32.totalorder %s2602_s19, 0  ;;  %s2966_s8 = sld [smem:[#allocation11_spill]] }
   0x8   : > { %p2610_p3 = pnand %p2207_p0, %p378_p1  ;;  %s2968_s4 = sld [smem:[#allocation10_spill]] }
   0x9   : > { %s2486_s27 = smov [#allocation4]   ;;  %s2487_s30 = smov [#allocation2]  }
   0xa   : > { %p2307_p4 = pneg %p2610_p3  ;;  %s423_s28 = sshll.u32 %s2486_s27, 4  ;;  %s424_s28 = int_to_ptr.vmem [resolvable:$true] %s423_s28 }
   0xb   : > { %s400_s16 = sshll.u32 %s2487_s30, 4  ;;  %s450_s21 = sshll.u32 %s2960_s14, 4  ;;  %s401_s16 = int_to_ptr.vmem [resolvable:$true] %s400_s16  ;;  %s451_s21 = int_to_ptr.hbm [resolvable:$true] %s450_s21 }
   0xc   : > { %p2621_p5 = pnand %p2317_p2, %p2307_p4  ;;  %s2488_s24 = smov 128  }
   0xd   : > { %s421_s22 = sshll.u32 %s2966_s8, 4  ;;  %s2489_s25 = smov 8   ;;  %s422_s22 = int_to_ptr.hbm [resolvable:$true] %s421_s22 }
   0xe   : > { %s398_s26 = sshll.u32 %s2968_s4, 4  ;;  %s2490_s27 = smov [#allocation6]   ;;  %s399_s26 = int_to_ptr.hbm [resolvable:$true] %s398_s26 }
   0xf   : > { %2313 = dma.hbm_to_vmem [thread:$0]  (!%p2621_p5), %s422_s22, 4096, %s424_s28, [#allocation5], %s2488_s24, %s2488_s24, %s2489_s25  }
  0x10   : > { %2310 = dma.hbm_to_vmem [thread:$0]  (!%p2621_p5), %s399_s26, 16384, %s401_s16, [#allocation3], %s2488_s24, %s2488_s24, %s2489_s25  }
  0x11   : > { %s452_s4 = sshll.u32 %s2490_s27, 4  ;;  %s2491_s8 = smov 256   ;;  %s453_s4 = int_to_ptr.vmem [resolvable:$true] %s452_s4 }
  0x12   : > { %s2492_s18 = smov 16   ;;  %476 = sbr.rel (%p2610_p3) target bundleno = 1809 (0x711), region = 80 }
  0x13   : > { %2316 = dma.hbm_to_vmem [thread:$0]  (!%p2621_p5), %s451_s21, 8192, %s453_s4, [#allocation5], %s2491_s8, %s2491_s8, %s2492_s18  }
  0x17   : > { %2475 = dma.done.wait (%p2317_p2), [#allocation3], 16384  }
  0x18   : > { %2477 = vsyncadd (%p2317_p2), [#allocation3], 4294950912 }
  0x19   : > { %2479 = dma.done.wait (%p2317_p2), [#allocation5], 12288  }
  0x1a   : > { %2481 = vsyncadd (%p2317_p2), [#allocation5], 4294955008  ;;  %p535_p6 = scmp.lt.s32.totalorder %s2602_s19, 1  ;;  %s2493_s23 = smov 112   ;;  %v2226_v5 = vld [vmem:[%s2949_s3 + $0x10] sm:$0x3] }
  0x1b   : > { %s2494_s26 = smov 111   ;;  %s2495_s28 = smov 113   ;;  %v2225_v7 = vld [vmem:[%s2949_s3 + $0xe] sm:$0x3]  ;;  %vm666_vm0 = vcmask 916480   ;;  %vm685_vm1 = vcmask 908288  }
  0x1c   : > { %s2974_s19 = smov (!%p535_p6, %s2602_s19), 1  ;;  %s2496_s29 = smov 127   ;;  %v694_v8 = vperm.slane %v2226_v5, 0  ;;  %v695_v9 = vperm.slane %v2226_v5, 1  ;;  %v2224_v10 = vld [vmem:[%s2949_s3 + $0xc] sm:$0x3] }
  0x1d   : > { %s2292_s4 = sshll.u32 %s2974_s19, 4  ;;  %s2497_s30 = smov 1   ;;  %vm647_vm2 = vcmask 924672   ;;  %v675_v13 = vperm.slane %v2225_v7, 0  ;;  %v676_v14 = vperm.slane %v2225_v7, 1  ;;  %v656_v21 = vperm.slane %v2224_v10, 0 }
  0x1e   : > { %s539_s22 = scalar_lea.vmem %s2946_s0, %s2292_s4  ;;  %s2498_s16 = smov 15   ;;  %v657_v22 = vperm.slane %v2224_v10, 1  ;;  %v2223_v25 = vld [vmem:[%s2949_s3 + $0xa] sm:$0x3]  ;;  %vm628_vm3 = vcmask 1039360   ;;  %vm610_vm4 = vcmask 7168  }
  0x1f   : > { %v2652_v0 = vld [vmem:[%s539_s22] sm:$0xff]  ;;  %v2657_v1 = vld [vmem:[%s539_s22 + $0x8] sm:$0xff]  ;;  %s2499_s17 = smov 16   ;;  %s2500_s20 = smov 17   ;;  %v637_v31 = vperm.slane %v2223_v25, 0  ;;  %v638_v32 = vperm.slane %v2223_v25, 1 }
  0x20   : > { %662 = vrot.lane.b32.xlu1 %v2652_v0, %s2493_s23  ;;  %681 = vrot.lane.b32.xlu0 %v2652_v0, %s2494_s26  ;;  %v2222_v39 = vld [vmem:[%s2949_s3 + $0x6] sm:$0x3]  ;;  %v2221_v40 = vld [vmem:[%s2949_s3 + $0x4] sm:$0x3]  ;;  %vm591_vm5 = vcmask 121856   ;;  %v2501_v49 = vmov 0  }
  0x21   : > { %643 = vrot.lane.b32.xlu2 %v2652_v0, %s2495_s28  ;;  %v618_v41 = vperm.slane %v2222_v39, 0  ;;  %v702_v42 = vld [vmem:[%s2948_s2] sm:$0xff]  ;;  %v703_v43 = vld [vmem:[%s2948_s2 + $0x8] sm:$0xff]  ;;  %v619_v44 = vperm.slane %v2222_v39, 1  ;;  %v599_v46 = vperm.slane %v2221_v40, 0  ;;  %v600_v47 = vperm.slane %v2221_v40, 1  ;;  %2361 = vset.pattern.permute.xlu1 %v2501_v49 }
  0x22   : > { %v786_v48 = vld [vmem:[#allocation2 + $0x78] sm:$0xff]  ;;  %2362 = vset.pattern.permute.xlu2 %v2501_v49  ;;  %v785_v53 = vld [vmem:[#allocation2 + $0x70] sm:$0xff]  ;;  %v784_v63 = vld [vmem:[#allocation2 + $0x68] sm:$0xff]  ;;  %2363 = vset.pattern.permute.xlu0 %v2501_v49  ;;  %vm572_vm6 = vcmask 130048   ;;  %vm554_vm7 = vcmask 138240   ;;  %vm714_vm8 = vcmask 588800  }
  0x23   : > { %v802_v50 = vld [vmem:[#allocation2 + $0xf8] sm:$0xff]  ;;  %803 = vmatpush.msra.mxu2 %v786_v48  ;;  %v801_v62 = vld [vmem:[#allocation2 + $0xf0] sm:$0xff]  ;;  %v799_v5 = vld [vmem:[#allocation2 + $0xe0] sm:$0xff]  ;;  %s2506_s21 = smov 63   ;;  %s2507_s24 = smov 7   ;;  %vm1236_vm9 = vcmask 457728  }
  0x24   : > { %826 = vmatpush.msra.mxu3 %v802_v50  ;;  %v781_v10 = vld [vmem:[#allocation2 + $0x50] sm:$0xff]  ;;  %v792_v39 = vld [vmem:[#allocation2 + $0xa8] sm:$0xff]  ;;  %v775_v40 = vld [vmem:[#allocation2 + $0x20] sm:$0xff]  ;;  %s2508_s25 = smov 65   ;;  %s2509_s27 = smov 72   ;;  %vm1214_vm10 = vcmask 465920  }
  0x25   : > { %804 = vmatpush.msra.mxu2 %v785_v53  ;;  %v861_v48 = vld [vmem:[#allocation2 + $0x158] sm:$0xff]  ;;  %v876_v53 = vld [vmem:[#allocation2 + $0x1d0] sm:$0xff]  ;;  %s2510_s4 = smov 71   ;;  %s2511_s8 = smov 8   ;;  %vm1192_vm11 = vcmask 515072   ;;  %vm1149_vm12 = vcmask 56320  }
  0x26   : > { %827 = vmatpush.msra.mxu3 %v801_v62  ;;  %v877_v49 = vld [vmem:[#allocation2 + $0x1d8] sm:$0xff]  ;;  %v787_v62 = vld [vmem:[#allocation2 + $0x80] sm:$0xff]  ;;  %s2512_s18 = smov 9   ;;  %s2513_s22 = smov 73   ;;  %vm1127_vm13 = vcmask 64512   ;;  %vm1106_vm14 = vcmask 72704  }
  0x27   : > { %805 = vmatpush.msra.mxu2 %v784_v63  ;;  %v790_v50 = vld [vmem:[#allocation2 + $0x98] sm:$0xff]  ;;  %vm1258_vm15 = vcmask 449536  }
  0x28   : > { %664 = vrot.lane.b32.xlu1 %v2657_v1, %s2493_s23  ;;  %683 = vrot.lane.b32.xlu0 %v2657_v1, %s2494_s26  ;;  %v946_v63 = vld [vmem:[#allocation2 + $0x278] sm:$0xff] }
  0x29   : > { %645 = vrot.lane.b32.xlu2 %v2657_v1, %s2495_s28  ;;  %s2502_s28 = smov 57  }
  0x30   : > { %626 = vrot.lane.b32.xlu1 %v2657_v1, %s2496_s29  ;;  %624 = vrot.lane.b32.xlu0 %v2652_v0, %s2496_s29 }
  0x31   : > { %605 = vrot.lane.b32.xlu2 %v2657_v1, %s2497_s30 }
  0x38   : > { %586 = vrot.lane.b32.xlu1 %v2657_v1, %s2498_s16  ;;  %608 = vrot.lane.b32.xlu0 %v2652_v0, %s2497_s30 }
  0x39   : > { %589 = vrot.lane.b32.xlu2 %v2652_v0, %s2498_s16  ;;  %s2503_s16 = smov 56  }
  0x40   : > { %570 = vrot.lane.b32.xlu1 %v2652_v0, %s2499_s17  ;;  %567 = vrot.lane.b32.xlu0 %v2657_v1, %s2499_s17  ;;  %s2504_s17 = smov 120  }
  0x41   : > { %548 = vrot.lane.b32.xlu2 %v2657_v1, %s2500_s20 }
  0x48   : > { %552 = vrot.lane.b32.xlu0 %v2652_v0, %s2500_s20  ;;  %706 = vperm.xlu1 %2361, %v702_v42   ;;  %v879_v42 = vld [vmem:[#allocation2 + $0x1e8] sm:$0xff]  ;;  %s2505_s20 = smov 121  }
  0x49   : > { %711 = vperm.xlu2 %2362, %v703_v43   ;;  %v791_v43 = vld [vmem:[#allocation2 + $0xa0] sm:$0xff] }
  0x7b   : > { %v644_v2 = vpop.permute.xlu2 %643 }
  0x83   : > { %v646_v6 = vpop.permute.xlu2 %645 }
  0x84   : > { %v648_v23 = vsel %vm647_vm2, %v644_v2, %v646_v6  ;;  %v652_v24 = vsel %vm647_vm2, %v646_v6, %v644_v2  ;;  %v783_v2 = vld [vmem:[#allocation2 + $0x60] sm:$0xff]  ;;  %v782_v6 = vld [vmem:[#allocation2 + $0x58] sm:$0xff]  ;;  %vm1447_vm2 = vcmask 31744  }
  0x85   : > { %v660_v29 = vmul.f32 %v656_v21, %v648_v23  ;;  %v661_v30 = vmul.f32 %v657_v22, %v652_v24  ;;  %806 = vmatpush.msra.mxu2 %v783_v2  ;;  %v795_v23 = vld [vmem:[#allocation2 + $0xc0] sm:$0xff]  ;;  %v778_v24 = vld [vmem:[#allocation2 + $0x38] sm:$0xff] }
  0x86   : > { %v962_v2 = vld [vmem:[#allocation2 + $0x2f8] sm:$0xff] }
  0x87   : > { %807 = vmatpush.msra.mxu2 %v782_v6  ;;  %v961_v6 = vld [vmem:[#allocation2 + $0x2f0] sm:$0xff] }
  0x89   : > { %808 = vmatpush.msra.mxu2 %v781_v10  ;;  %v960_v10 = vld [vmem:[#allocation2 + $0x2e8] sm:$0xff] }
  0x8b   : > { %v606_v28 = vpop.permute.xlu2 %605 }
  0x92   : > { %v663_v3 = vpop.permute.xlu1 %662  ;;  %v682_v4 = vpop.permute.xlu0 %681 }
  0x93   : > { %v590_v45 = vpop.permute.xlu2 %589 }
  0x9a   : > { %v665_v11 = vpop.permute.xlu1 %664  ;;  %v684_v12 = vpop.permute.xlu0 %683 }
  0x9b   : > { %v667_v15 = vsel %vm666_vm0, %v663_v3, %v665_v11  ;;  %v671_v16 = vsel %vm666_vm0, %v665_v11, %v663_v3  ;;  %v686_v17 = vsel %vm685_vm1, %v682_v4, %v684_v12  ;;  %v690_v18 = vsel %vm685_vm1, %v684_v12, %v682_v4 }
  0x9c   : > { %v698_v19 = vmul.f32 %v694_v8, %v686_v17  ;;  %v699_v20 = vmul.f32 %v695_v9, %v690_v18  ;;  %v679_v26 = vmul.f32 %v675_v13, %v667_v15  ;;  %v680_v27 = vmul.f32 %v676_v14, %v671_v16  ;;  %v798_v9 = vld [vmem:[#allocation2 + $0xd8] sm:$0xff]  ;;  %v797_v15 = vld [vmem:[#allocation2 + $0xd0] sm:$0xff]  ;;  %v780_v16 = vld [vmem:[#allocation2 + $0x48] sm:$0xff] }
  0x9d   : > { %v559_v17 = vld [vmem:[%s2949_s3] sm:$0x3]  ;;  %v796_v18 = vld [vmem:[#allocation2 + $0xc8] sm:$0xff]  ;;  %809 = vmatpush.msra.mxu2 %v780_v16  ;;  %vm1331_vm0 = vcmask 523264   ;;  %vm1454_vm1 = vcmask 1043456  }
  0x9e   : > { %728 = vmatpush.msra.mxu0 %v698_v19  ;;  %751 = vmatpush.msra.mxu1 %v699_v20  ;;  %v779_v19 = vld [vmem:[#allocation2 + $0x40] sm:$0xff]  ;;  %v549_v20 = vpop.permute.xlu2 %548  ;;  %v561_v21 = vperm.slane %v559_v17, 0  ;;  %v562_v22 = vperm.slane %v559_v17, 1  ;;  %v853_v16 = vld [vmem:[#allocation2 + $0x118] sm:$0xff] }
  0x9f   : > { %810 = vmatpush.msra.mxu2 %v779_v19  ;;  %v869_v17 = vld [vmem:[#allocation2 + $0x198] sm:$0xff]  ;;  %v941_v19 = vld [vmem:[#allocation2 + $0x250] sm:$0xff] }
  0xa0   : > { %729 = vmatpush.msra.mxu0 %v679_v26  ;;  %752 = vmatpush.msra.mxu1 %v680_v27  ;;  %v794_v26 = vld [vmem:[#allocation2 + $0xb8] sm:$0xff]  ;;  %v777_v27 = vld [vmem:[#allocation2 + $0x30] sm:$0xff] }
  0xa1   : > { %811 = vmatpush.msra.mxu2 %v778_v24  ;;  %v867_v24 = vld [vmem:[#allocation2 + $0x188] sm:$0xff] }
  0xa2   : > { %v627_v33 = vpop.permute.xlu1 %626  ;;  %730 = vmatpush.msra.mxu0 %v660_v29  ;;  %753 = vmatpush.msra.mxu1 %v661_v30  ;;  %v625_v34 = vpop.permute.xlu0 %624 }
  0xa3   : > { %v629_v35 = vsel %vm628_vm3, %v625_v34, %v627_v33  ;;  %v633_v36 = vsel %vm628_vm3, %v627_v33, %v625_v34  ;;  %v865_v33 = vld [vmem:[#allocation2 + $0x178] sm:$0xff]  ;;  %812 = vmatpush.msra.mxu2 %v777_v27 }
  0xa4   : > { %v641_v37 = vmul.f32 %v637_v31, %v629_v35  ;;  %v642_v38 = vmul.f32 %v638_v32, %v633_v36  ;;  %v700_v32 = vld [vmem:[%s2947_s1] sm:$0xff]  ;;  %v793_v35 = vld [vmem:[#allocation2 + $0xb0] sm:$0xff]  ;;  %v776_v36 = vld [vmem:[#allocation2 + $0x28] sm:$0xff] }
  0xa5   : > { %v881_v34 = vld [vmem:[#allocation2 + $0x1f8] sm:$0xff]  ;;  %813 = vmatpush.msra.mxu2 %v776_v36 }
  0xa6   : > { %731 = vmatpush.msra.mxu0 %v641_v37  ;;  %754 = vmatpush.msra.mxu1 %v642_v38  ;;  %v864_v37 = vld [vmem:[#allocation2 + $0x170] sm:$0xff]  ;;  %v1027_v27 = vld [vmem:[#allocation2 + $0x378] sm:$0xff] }
  0xa7   : > { %v880_v38 = vld [vmem:[#allocation2 + $0x1f0] sm:$0xff]  ;;  %814 = vmatpush.msra.mxu2 %v775_v40  ;;  %v1039_v36 = vld [vmem:[#allocation2 + $0x3d8] sm:$0xff]  ;;  %v956_v40 = vld [vmem:[#allocation2 + $0x2c8] sm:$0xff] }
  0xa8   : > { %732 = vmatpush.msra.mxu0 %v2652_v0  ;;  %755 = vmatpush.msra.mxu1 %v2657_v1  ;;  %v2220_v0 = vld [vmem:[%s2949_s3 + $0x2] sm:$0x3]  ;;  %v800_v1 = vld [vmem:[#allocation2 + $0xe8] sm:$0xff] }
  0xa9   : > { %v580_v3 = vperm.slane %v2220_v0, 0  ;;  %v581_v4 = vperm.slane %v2220_v0, 1  ;;  %828 = vmatpush.msra.mxu3 %v800_v1  ;;  %v857_v0 = vld [vmem:[#allocation2 + $0x138] sm:$0xff] }
  0xaa   : > { %v587_v51 = vpop.permute.xlu1 %586  ;;  %v609_v52 = vpop.permute.xlu0 %608  ;;  %v873_v1 = vld [vmem:[#allocation2 + $0x1b8] sm:$0xff] }
  0xab   : > { %v611_v54 = vsel %vm610_vm4, %v609_v52, %v606_v28  ;;  %v614_v55 = vsel %vm610_vm4, %v606_v28, %v609_v52  ;;  %v592_v56 = vsel %vm591_vm5, %v590_v45, %v587_v51  ;;  %v595_v57 = vsel %vm591_vm5, %v587_v51, %v590_v45  ;;  %829 = vmatpush.msra.mxu3 %v799_v5  ;;  %v862_v45 = vld [vmem:[#allocation2 + $0x160] sm:$0xff]  ;;  %v773_v51 = vld [vmem:[#allocation2 + $0x10] sm:$0xff] }
  0xac   : > { %v622_v58 = vmul.f32 %v618_v41, %v614_v55  ;;  %v623_v59 = vmul.f32 %v619_v44, %v611_v54  ;;  %v603_v60 = vmul.f32 %v599_v46, %v595_v57  ;;  %v604_v61 = vmul.f32 %v600_v47, %v592_v56  ;;  %v863_v41 = vld [vmem:[#allocation2 + $0x168] sm:$0xff]  ;;  %v774_v44 = vld [vmem:[#allocation2 + $0x18] sm:$0xff]  ;;  %v878_v46 = vld [vmem:[#allocation2 + $0x1e0] sm:$0xff] }
  0xad   : > { %830 = vmatpush.msra.mxu3 %v798_v9  ;;  %v701_v47 = vld [vmem:[%s2947_s1 + $0x8] sm:$0xff]  ;;  %815 = vmatpush.msra.mxu2 %v774_v44  ;;  %v860_v52 = vld [vmem:[#allocation2 + $0x150] sm:$0xff]  ;;  %v772_v55 = vld [vmem:[#allocation2 + $0x8] sm:$0xff] }
  0xae   : > { %733 = vmatpush.msra.mxu0 %v622_v58  ;;  %756 = vmatpush.msra.mxu1 %v623_v59  ;;  %v789_v54 = vld [vmem:[#allocation2 + $0x90] sm:$0xff]  ;;  %v859_v56 = vld [vmem:[#allocation2 + $0x148] sm:$0xff]  ;;  %v771_v59 = vld [vmem:[#allocation2] sm:$0xff] }
  0xaf   : > { %831 = vmatpush.msra.mxu3 %v797_v15  ;;  %v875_v57 = vld [vmem:[#allocation2 + $0x1c8] sm:$0xff]  ;;  %816 = vmatpush.msra.mxu2 %v773_v51  ;;  %v872_v5 = vld [vmem:[#allocation2 + $0x1b0] sm:$0xff]  ;;  %v942_v15 = vld [vmem:[#allocation2 + $0x258] sm:$0xff] }
  0xb0   : > { %734 = vmatpush.msra.mxu0 %v603_v60  ;;  %757 = vmatpush.msra.mxu1 %v604_v61  ;;  %v788_v58 = vld [vmem:[#allocation2 + $0x88] sm:$0xff]  ;;  %v858_v60 = vld [vmem:[#allocation2 + $0x140] sm:$0xff]  ;;  %v937_v51 = vld [vmem:[#allocation2 + $0x230] sm:$0xff] }
  0xb1   : > { %832 = vmatpush.msra.mxu3 %v796_v18  ;;  %v874_v61 = vld [vmem:[#allocation2 + $0x1c0] sm:$0xff]  ;;  %817 = vmatpush.msra.mxu2 %v772_v55  ;;  %v871_v9 = vld [vmem:[#allocation2 + $0x1a8] sm:$0xff]  ;;  %v958_v18 = vld [vmem:[#allocation2 + $0x2d8] sm:$0xff] }
  0xb2   : > { %v571_v7 = vpop.permute.xlu1 %570  ;;  %v568_v8 = vpop.permute.xlu0 %567  ;;  %v955_v44 = vld [vmem:[#allocation2 + $0x2c0] sm:$0xff]  ;;  %v936_v55 = vld [vmem:[#allocation2 + $0x228] sm:$0xff] }
  0xb3   : > { %v573_v11 = vsel %vm572_vm6, %v571_v7, %v568_v8  ;;  %v576_v12 = vsel %vm572_vm6, %v568_v8, %v571_v7  ;;  %833 = vmatpush.msra.mxu3 %v795_v23  ;;  %818 = vmatpush.msra.mxu2 %v771_v59  ;;  %v944_v7 = vld [vmem:[#allocation2 + $0x268] sm:$0xff]  ;;  %v935_v59 = vld [vmem:[#allocation2 + $0x220] sm:$0xff] }
  0xb4   : > { %v584_v13 = vmul.f32 %v580_v3, %v576_v12  ;;  %v585_v14 = vmul.f32 %v581_v4, %v573_v11  ;;  %v945_v3 = vld [vmem:[#allocation2 + $0x270] sm:$0xff]  ;;  %v855_v8 = vld [vmem:[#allocation2 + $0x128] sm:$0xff]  ;;  %v943_v11 = vld [vmem:[#allocation2 + $0x260] sm:$0xff] }
  0xb5   : > { %834 = vmatpush.msra.mxu3 %v794_v26  ;;  %v856_v4 = vld [vmem:[#allocation2 + $0x130] sm:$0xff]  ;;  %963 = vmatpush.msrb.mxu2 %v946_v63  ;;  %v854_v12 = vld [vmem:[#allocation2 + $0x120] sm:$0xff]  ;;  %v851_v23 = vld [vmem:[#allocation2 + $0x108] sm:$0xff] }
  0xb6   : > { %735 = vmatpush.msra.mxu0 %v584_v13  ;;  %758 = vmatpush.msra.mxu1 %v585_v14  ;;  %v870_v13 = vld [vmem:[#allocation2 + $0x1a0] sm:$0xff]  ;;  %v934_v63 = vld [vmem:[#allocation2 + $0x218] sm:$0xff] }
  0xb7   : > { %835 = vmatpush.msra.mxu3 %v793_v35  ;;  %964 = vmatpush.msrb.mxu2 %v945_v3  ;;  %v959_v14 = vld [vmem:[#allocation2 + $0x2e0] sm:$0xff]  ;;  %v1023_v35 = vld [vmem:[#allocation2 + $0x358] sm:$0xff]  ;;  %v933_v3 = vld [vmem:[#allocation2 + $0x210] sm:$0xff] }
  0xb8   : > { %v866_v26 = vld [vmem:[#allocation2 + $0x180] sm:$0xff] }
  0xb9   : > { %836 = vmatpush.msra.mxu3 %v792_v39  ;;  %965 = vmatpush.msrb.mxu2 %v944_v7  ;;  %v940_v39 = vld [vmem:[#allocation2 + $0x248] sm:$0xff] }
  0xba   : > { %v553_v25 = vpop.permute.xlu0 %552  ;;  %v932_v7 = vld [vmem:[#allocation2 + $0x208] sm:$0xff] }
  0xbb   : > { %v555_v28 = vsel %vm554_vm7, %v553_v25, %v549_v20  ;;  %v558_v29 = vsel %vm554_vm7, %v549_v20, %v553_v25  ;;  %837 = vmatpush.msra.mxu3 %v791_v43  ;;  %966 = vmatpush.msrb.mxu2 %v943_v11  ;;  %v852_v20 = vld [vmem:[#allocation2 + $0x110] sm:$0xff]  ;;  %v850_v25 = vld [vmem:[#allocation2 + $0x100] sm:$0xff] }
  0xbc   : > { %v565_v30 = vmul.f32 %v561_v21, %v558_v29  ;;  %v566_v31 = vmul.f32 %v562_v22, %v555_v28  ;;  %v868_v21 = vld [vmem:[#allocation2 + $0x190] sm:$0xff]  ;;  %v1043_v28 = vld [vmem:[#allocation2 + $0x3f8] sm:$0xff]  ;;  %v939_v43 = vld [vmem:[#allocation2 + $0x240] sm:$0xff] }
  0xbd   : > { %838 = vmatpush.msra.mxu3 %v790_v50  ;;  %967 = vmatpush.msrb.mxu2 %v942_v15  ;;  %v957_v22 = vld [vmem:[#allocation2 + $0x2d0] sm:$0xff]  ;;  %v1035_v50 = vld [vmem:[#allocation2 + $0x3b8] sm:$0xff]  ;;  %v931_v11 = vld [vmem:[#allocation2 + $0x200] sm:$0xff]  ;;  %v707_v15 = vpop.permute.xlu1 %706 }
  0xbe   : > { %736 = vmatpush.msra.mxu0 %v565_v30  ;;  %759 = vmatpush.msra.mxu1 %v566_v31  ;;  %v1026_v29 = vld [vmem:[#allocation2 + $0x370] sm:$0xff]  ;;  %v1025_v31 = vld [vmem:[#allocation2 + $0x368] sm:$0xff] }
  0xbf   : > { %2227 = vmatmul.msk.f32.vlgmr.msra.gmra.mxu0 %vm714_vm8, %v700_v32  ;;  %2229 = vmatmul.msk.f32.vlgmr.msra.gmra.mxu1 %vm714_vm8, %v700_v32  ;;  %v1042_v30 = vld [vmem:[#allocation2 + $0x3f0] sm:$0xff]  ;;  %v1041_v32 = vld [vmem:[#allocation2 + $0x3e8] sm:$0xff] }
  0xc0   : > { %882 = vmatpush.msrb.mxu0 %v865_v33  ;;  %905 = vmatpush.msrb.mxu1 %v881_v34  ;;  %v1024_v33 = vld [vmem:[#allocation2 + $0x360] sm:$0xff] }
  0xc1   : > { %839 = vmatpush.msra.mxu3 %v789_v54  ;;  %968 = vmatpush.msrb.mxu2 %v941_v19  ;;  %v1040_v34 = vld [vmem:[#allocation2 + $0x3e0] sm:$0xff]  ;;  %v1034_v54 = vld [vmem:[#allocation2 + $0x3b0] sm:$0xff] }
  0xc2   : > { %883 = vmatpush.msrb.mxu0 %v864_v37  ;;  %906 = vmatpush.msrb.mxu1 %v880_v38  ;;  %v1022_v37 = vld [vmem:[#allocation2 + $0x350] sm:$0xff] }
  0xc3   : > { %840 = vmatpush.msra.mxu3 %v788_v58  ;;  %v1038_v38 = vld [vmem:[#allocation2 + $0x3d0] sm:$0xff]  ;;  %969 = vmatpush.msrb.mxu2 %v940_v39  ;;  %v1033_v58 = vld [vmem:[#allocation2 + $0x3a8] sm:$0xff] }
  0xc4   : > { %884 = vmatpush.msrb.mxu0 %v863_v41  ;;  %907 = vmatpush.msrb.mxu1 %v879_v42  ;;  %v1021_v41 = vld [vmem:[#allocation2 + $0x348] sm:$0xff] }
  0xc5   : > { %841 = vmatpush.msra.mxu3 %v787_v62  ;;  %v1037_v42 = vld [vmem:[#allocation2 + $0x3c8] sm:$0xff]  ;;  %970 = vmatpush.msrb.mxu2 %v939_v43  ;;  %v1032_v62 = vld [vmem:[#allocation2 + $0x3a0] sm:$0xff] }
  0xc6   : > { %885 = vmatpush.msrb.mxu0 %v862_v45  ;;  %908 = vmatpush.msrb.mxu1 %v878_v46  ;;  %v1020_v45 = vld [vmem:[#allocation2 + $0x340] sm:$0xff] }
  0xc7   : > { %2228 = vmatmul.msk.f32.gmra.mxu0 %vm714_vm8, %v701_v47  ;;  %2230 = vmatmul.msk.f32.gmra.mxu1 %vm714_vm8, %v701_v47  ;;  %v1036_v46 = vld [vmem:[#allocation2 + $0x3c0] sm:$0xff]  ;;  %v938_v47 = vld [vmem:[#allocation2 + $0x238] sm:$0xff] }
  0xc8   : > { %886 = vmatpush.msrb.mxu0 %v861_v48  ;;  %909 = vmatpush.msrb.mxu1 %v877_v49  ;;  %v954_v48 = vld [vmem:[#allocation2 + $0x2b8] sm:$0xff] }
  0xc9   : > { %986 = vmatpush.msrb.mxu3 %v962_v2  ;;  %v1019_v49 = vld [vmem:[#allocation2 + $0x338] sm:$0xff]  ;;  %971 = vmatpush.msrb.mxu2 %v938_v47 }
  0xca   : > { %887 = vmatpush.msrb.mxu0 %v860_v52  ;;  %910 = vmatpush.msrb.mxu1 %v876_v53  ;;  %v953_v52 = vld [vmem:[#allocation2 + $0x2b0] sm:$0xff]  ;;  %v1031_v2 = vld [vmem:[#allocation2 + $0x398] sm:$0xff] }
  0xcb   : > { %987 = vmatpush.msrb.mxu3 %v961_v6  ;;  %v1018_v53 = vld [vmem:[#allocation2 + $0x330] sm:$0xff]  ;;  %972 = vmatpush.msrb.mxu2 %v937_v51 }
  0xcc   : > { %888 = vmatpush.msrb.mxu0 %v859_v56  ;;  %911 = vmatpush.msrb.mxu1 %v875_v57  ;;  %v952_v56 = vld [vmem:[#allocation2 + $0x2a8] sm:$0xff]  ;;  %v1030_v6 = vld [vmem:[#allocation2 + $0x390] sm:$0xff] }
  0xcd   : > { %988 = vmatpush.msrb.mxu3 %v960_v10  ;;  %v1017_v57 = vld [vmem:[#allocation2 + $0x328] sm:$0xff]  ;;  %973 = vmatpush.msrb.mxu2 %v936_v55 }
  0xce   : > { %889 = vmatpush.msrb.mxu0 %v858_v60  ;;  %912 = vmatpush.msrb.mxu1 %v874_v61  ;;  %v951_v60 = vld [vmem:[#allocation2 + $0x2a0] sm:$0xff]  ;;  %v1029_v10 = vld [vmem:[#allocation2 + $0x388] sm:$0xff] }
  0xcf   : > { %989 = vmatpush.msrb.mxu3 %v959_v14  ;;  %v1016_v61 = vld [vmem:[#allocation2 + $0x320] sm:$0xff]  ;;  %974 = vmatpush.msrb.mxu2 %v935_v59  ;;  %v1269_v59 = vld [vmem:[%s2952_s6] sm:$0xf] }
  0xd0   : > { %890 = vmatpush.msrb.mxu0 %v857_v0  ;;  %913 = vmatpush.msrb.mxu1 %v873_v1  ;;  %v950_v0 = vld [vmem:[#allocation2 + $0x298] sm:$0xff]  ;;  %v1028_v14 = vld [vmem:[#allocation2 + $0x380] sm:$0xff] }
  0xd1   : > { %990 = vmatpush.msrb.mxu3 %v958_v18  ;;  %v1015_v1 = vld [vmem:[#allocation2 + $0x318] sm:$0xff]  ;;  %975 = vmatpush.msrb.mxu2 %v934_v63 }
  0xd2   : > { %891 = vmatpush.msrb.mxu0 %v856_v4  ;;  %914 = vmatpush.msrb.mxu1 %v872_v5  ;;  %v949_v4 = vld [vmem:[#allocation2 + $0x290] sm:$0xff] }
  0xd3   : > { %991 = vmatpush.msrb.mxu3 %v957_v22  ;;  %v1014_v5 = vld [vmem:[#allocation2 + $0x310] sm:$0xff]  ;;  %976 = vmatpush.msrb.mxu2 %v933_v3  ;;  %v712_v22 = vpop.permute.xlu2 %711 }
  0xd4   : > { %892 = vmatpush.msrb.mxu0 %v855_v8  ;;  %915 = vmatpush.msrb.mxu1 %v871_v9  ;;  %v948_v8 = vld [vmem:[#allocation2 + $0x288] sm:$0xff] }
  0xd5   : > { %992 = vmatpush.msrb.mxu3 %v956_v40  ;;  %v1013_v9 = vld [vmem:[#allocation2 + $0x308] sm:$0xff]  ;;  %977 = vmatpush.msrb.mxu2 %v932_v7 }
  0xd6   : > { %893 = vmatpush.msrb.mxu0 %v854_v12  ;;  %916 = vmatpush.msrb.mxu1 %v870_v13  ;;  %v947_v12 = vld [vmem:[#allocation2 + $0x280] sm:$0xff] }
  0xd7   : > { %993 = vmatpush.msrb.mxu3 %v955_v44  ;;  %v1012_v13 = vld [vmem:[#allocation2 + $0x300] sm:$0xff]  ;;  %978 = vmatpush.msrb.mxu2 %v931_v11 }
  0xd8   : > { %894 = vmatpush.msrb.mxu0 %v853_v16  ;;  %917 = vmatpush.msrb.mxu1 %v869_v17 }
  0xd9   : > { %994 = vmatpush.msrb.mxu3 %v954_v48 }
  0xda   : > { %895 = vmatpush.msrb.mxu0 %v852_v20  ;;  %918 = vmatpush.msrb.mxu1 %v868_v21 }
  0xdb   : > { %995 = vmatpush.msrb.mxu3 %v953_v52 }
  0xdc   : > { %896 = vmatpush.msrb.mxu0 %v851_v23  ;;  %919 = vmatpush.msrb.mxu1 %v867_v24 }
  0xdd   : > { %996 = vmatpush.msrb.mxu3 %v952_v56 }
  0xde   : > { %897 = vmatpush.msrb.mxu0 %v850_v25  ;;  %920 = vmatpush.msrb.mxu1 %v866_v26 }
  0xdf   : > { %997 = vmatpush.msrb.mxu3 %v951_v60  ;;  %v1708_v60 = vld [vmem:[%s2956_s10] sm:$0xff] }
  0xe0   : > { %1044 = vmatpush.msra.mxu0 %v1027_v27  ;;  %1067 = vmatpush.msra.mxu1 %v1043_v28 }
  0xe1   : > { %998 = vmatpush.msrb.mxu3 %v950_v0 }
  0xe2   : > { %1045 = vmatpush.msra.mxu0 %v1026_v29  ;;  %1068 = vmatpush.msra.mxu1 %v1042_v30 }
  0xe3   : > { %999 = vmatpush.msrb.mxu3 %v949_v4 }
  0xe4   : > { %1046 = vmatpush.msra.mxu0 %v1025_v31  ;;  %1069 = vmatpush.msra.mxu1 %v1041_v32 }
  0xe5   : > { %1000 = vmatpush.msrb.mxu3 %v948_v8 }
  0xe6   : > { %1047 = vmatpush.msra.mxu0 %v1024_v33  ;;  %1070 = vmatpush.msra.mxu1 %v1040_v34 }
  0xe7   : > { %1001 = vmatpush.msrb.mxu3 %v947_v12 }
  0xe8   : > { %1048 = vmatpush.msra.mxu0 %v1023_v35  ;;  %1071 = vmatpush.msra.mxu1 %v1039_v36 }
  0xea   : > { %1049 = vmatpush.msra.mxu0 %v1022_v37  ;;  %1072 = vmatpush.msra.mxu1 %v1038_v38 }
  0xec   : > { %1050 = vmatpush.msra.mxu0 %v1021_v41  ;;  %1073 = vmatpush.msra.mxu1 %v1037_v42 }
  0xee   : > { %1051 = vmatpush.msra.mxu0 %v1020_v45  ;;  %1074 = vmatpush.msra.mxu1 %v1036_v46 }
  0xf0   : > { %1052 = vmatpush.msra.mxu0 %v1019_v49  ;;  %1075 = vmatpush.msra.mxu1 %v1035_v50 }
  0xf2   : > { %1053 = vmatpush.msra.mxu0 %v1018_v53  ;;  %1076 = vmatpush.msra.mxu1 %v1034_v54 }
  0xf4   : > { %1054 = vmatpush.msra.mxu0 %v1017_v57  ;;  %1077 = vmatpush.msra.mxu1 %v1033_v58 }
  0xf6   : > { %1055 = vmatpush.msra.mxu0 %v1016_v61  ;;  %1078 = vmatpush.msra.mxu1 %v1032_v62  ;;  %v2066_v61 = vld [vmem:[%s2959_s13] sm:$0x3] }
  0xf8   : > { %1056 = vmatpush.msra.mxu0 %v1015_v1  ;;  %1079 = vmatpush.msra.mxu1 %v1031_v2 }
  0xfa   : > { %1057 = vmatpush.msra.mxu0 %v1014_v5  ;;  %1080 = vmatpush.msra.mxu1 %v1030_v6 }
  0xfc   : > { %1058 = vmatpush.msra.mxu0 %v1013_v9  ;;  %1081 = vmatpush.msra.mxu1 %v1029_v10 }
  0xfe   : > { %1059 = vmatpush.msra.mxu0 %v1012_v13  ;;  %1082 = vmatpush.msra.mxu1 %v1028_v14  ;;  %v1268_v14 = vld [vmem:[%s2951_s5] sm:$0xff] }
  0xff   : > { %1276 = vst [vmem:[#allocation1] ss:$2 sm:$0xff] %v1268_v14 }
 0x13c   : > { %v738_v16 = vpop.f32.mrf.mxu0  ;;  %v761_v17 = vpop.f32.mrf.mxu1 }
 0x13d   : > { %v739_v18 = vadd.f32 %v738_v16, %v707_v15  ;;  %v762_v19 = vadd.f32 %v761_v17, %v707_v15  ;;  %v2364_v15 = vld [vmem:[%s2953_s7 + $0x7] ss:$0 sm:$0xff] }
 0x13f   : > { %v767_v20 = vmax.f32 %v739_v18, 0.0  ;;  %v768_v21 = vmax.f32 %v762_v19, 0.0 }
 0x141   : > { %819 = vmatmul.f32.vlgmr.msra.gmra.mxu2 %v767_v20  ;;  %842 = vmatmul.f32.vlgmr.msra.gmra.mxu3 %v768_v21 }
 0x142   : > { %898 = vmatmul.f32.vlgmr.msrb.gmra.mxu0 %v767_v20  ;;  %921 = vmatmul.f32.vlgmr.msrb.gmra.mxu1 %v768_v21 }
 0x144   : > { %v741_v23 = vpop.f32.mrf.mxu0  ;;  %v764_v24 = vpop.f32.mrf.mxu1 }
 0x145   : > { %v742_v25 = vadd.f32 %v741_v23, %v712_v22  ;;  %v765_v26 = vadd.f32 %v764_v24, %v712_v22  ;;  %v2366_v24 = vld [vmem:[%s2953_s7 + $0x6] ss:$0 sm:$0xff] }
 0x147   : > { %v769_v27 = vmax.f32 %v742_v25, 0.0  ;;  %v770_v28 = vmax.f32 %v765_v26, 0.0 }
 0x149   : > { %822 = vmatmul.f32.gmra.mxu2 %v769_v27  ;;  %845 = vmatmul.f32.gmra.mxu3 %v770_v28 }
 0x14a   : > { %901 = vmatmul.f32.gmra.mxu0 %v769_v27  ;;  %924 = vmatmul.f32.gmra.mxu1 %v770_v28 }
 0x151   : > { %979 = vmatmul.f32.vlgmr.msrb.gmra.mxu2 %v767_v20  ;;  %1002 = vmatmul.f32.vlgmr.msrb.gmra.mxu3 %v768_v21 }
 0x152   : > { %1060 = vmatmul.f32.vlgmr.msra.gmra.mxu0 %v767_v20  ;;  %1083 = vmatmul.f32.vlgmr.msra.gmra.mxu1 %v768_v21 }
 0x159   : > { %982 = vmatmul.f32.gmra.mxu2 %v769_v27  ;;  %1005 = vmatmul.f32.gmra.mxu3 %v770_v28 }
 0x15a   : > { %1063 = vmatmul.f32.gmra.mxu0 %v769_v27  ;;  %1086 = vmatmul.f32.gmra.mxu1 %v770_v28  ;;  %v2365_v27 = vld [vmem:[%s2953_s7 + $0x5] ss:$0 sm:$0xff] }
 0x1bf   : > { %v899_v29 = vpop.f32.mrf.mxu0  ;;  %v922_v30 = vpop.f32.mrf.mxu1 }
 0x1c0   : > { %v923_v38 = vadd.f32 %v922_v30, %v899_v29 }
 0x1c4   : > { %v820_v31 = vpop.f32.mrf.mxu2  ;;  %v843_v32 = vpop.f32.mrf.mxu3 }
 0x1c5   : > { %v844_v37 = vadd.f32 %v843_v32, %v820_v31 }
 0x1c7   : > { %v902_v33 = vpop.f32.mrf.mxu0  ;;  %v925_v34 = vpop.f32.mrf.mxu1  ;;  %v928_v43 = vmax.f32 %v844_v37, %v923_v38 }
 0x1c8   : > { %v926_v51 = vadd.f32 %v925_v34, %v902_v33 }
 0x1cc   : > { %v823_v35 = vpop.f32.mrf.mxu2  ;;  %v846_v36 = vpop.f32.mrf.mxu3 }
 0x1cd   : > { %v847_v50 = vadd.f32 %v846_v36, %v823_v35  ;;  %v2367_v36 = vld [vmem:[%s2953_s7 + $0x3] ss:$0 sm:$0xff] }
 0x1cf   : > { %v1061_v39 = vpop.f32.mrf.mxu0  ;;  %v1084_v40 = vpop.f32.mrf.mxu1  ;;  %v929_v53 = vmax.f32 %v847_v50, %v926_v51 }
 0x1d0   : > { %v1085_v45 = vadd.f32 %v1084_v40, %v1061_v39  ;;  %v1363_v39 = vld [vmem:[#allocation4 + $0x78] sm:$0xff] }
 0x1d1   : > { %v1393_v40 = vld [vmem:[#allocation4 + $0xb8] sm:$0xff]  ;;  %1372 = vmatpush.msrb.mxu0 %v1363_v39  ;;  %v1386_v39 = vld [vmem:[#allocation4 + $0x80] sm:$0xff] }
 0x1d2   : > { %1402 = vmatpush.msrb.mxu1 %v1393_v40  ;;  %v1416_v40 = vld [vmem:[#allocation4 + $0xc0] sm:$0xff] }
 0x1d4   : > { %v980_v41 = vpop.f32.mrf.mxu2  ;;  %v1003_v42 = vpop.f32.mrf.mxu3 }
 0x1d5   : > { %v1004_v44 = vadd.f32 %v1003_v42, %v980_v41 }
 0x1d7   : > { %v1009_v46 = vmax.f32 %v928_v43, %v1004_v44  ;;  %v1064_v54 = vpop.f32.mrf.mxu0  ;;  %v1087_v55 = vpop.f32.mrf.mxu1  ;;  %v1362_v43 = vld [vmem:[#allocation4 + $0x70] sm:$0xff] }
 0x1d8   : > { %v1088_v57 = vadd.f32 %v1087_v55, %v1064_v54  ;;  %1373 = vmatpush.msrb.mxu0 %v1362_v43 }
 0x1d9   : > { %v2724_v47 = vmax.f32 %v1009_v46, %v1085_v45  ;;  %v1392_v45 = vld [vmem:[#allocation4 + $0xb0] sm:$0xff] }
 0x1da   : > { %1403 = vmatpush.msrb.mxu1 %v1392_v45 }
 0x1db   : > { %1208 = vrot.lane.b32.xlu1 %v2724_v47, %s2502_s28  ;;  %1230 = vrot.lane.b32.xlu0 %v2724_v47, %s2503_s16 }
 0x1dc   : > { %1224 = vrot.lane.b32.xlu2 %v2724_v47, %s2504_s17  ;;  %v983_v48 = vpop.f32.mrf.mxu2  ;;  %v1006_v49 = vpop.f32.mrf.mxu3 }
 0x1dd   : > { %v1007_v52 = vadd.f32 %v1006_v49, %v983_v48  ;;  %v2369_v49 = vld [vmem:[%s2953_s7 + $0x2] ss:$0 sm:$0xff] }
 0x1df   : > { %v1010_v56 = vmax.f32 %v929_v53, %v1007_v52  ;;  %v2368_v53 = vld [vmem:[%s2953_s7 + $0x1] ss:$0 sm:$0xff] }
 0x1e1   : > { %v2747_v58 = vmax.f32 %v1010_v56, %v1088_v57 }
 0x1e3   : > { %1180 = vrot.lane.b32.xlu1 %v2724_v47, %s2496_s29  ;;  %1202 = vrot.lane.b32.xlu0 %v2724_v47, %s2505_s20 }
 0x1e4   : > { %1186 = vrot.lane.b32.xlu2 %v2724_v47, %s2506_s21 }
 0x1eb   : > { %1143 = vrot.lane.b32.xlu1 %v2724_v47, %s2507_s24  ;;  %1165 = vrot.lane.b32.xlu0 %v2724_v47, %s2497_s30 }
 0x1ec   : > { %1159 = vrot.lane.b32.xlu2 %v2724_v47, %s2508_s25 }
 0x1f3   : > { %1115 = vrot.lane.b32.xlu1 %v2724_v47, %s2509_s27  ;;  %1137 = vrot.lane.b32.xlu0 %v2724_v47, %s2510_s4 }
 0x1f4   : > { %1121 = vrot.lane.b32.xlu2 %v2724_v47, %s2511_s8 }
 0x1fb   : > { %1232 = vrot.lane.b32.xlu1 %v2747_v58, %s2503_s16  ;;  %1100 = vrot.lane.b32.xlu0 %v2724_v47, %s2512_s18 }
 0x1fc   : > { %1094 = vrot.lane.b32.xlu2 %v2724_v47, %s2513_s22 }
 0x203   : > { %1204 = vrot.lane.b32.xlu1 %v2747_v58, %s2505_s20  ;;  %1226 = vrot.lane.b32.xlu0 %v2747_v58, %s2504_s17 }
 0x204   : > { %1210 = vrot.lane.b32.xlu2 %v2747_v58, %s2502_s28  ;;  %s2293_s28 = sshll.u32 %s2974_s19, 2 }
 0x205   : > { %s544_s20 = scalar_lea.vmem %s2961_s15, %s2293_s28 }
 0x20b   : > { %1167 = vrot.lane.b32.xlu1 %v2747_v58, %s2497_s30  ;;  %1188 = vrot.lane.b32.xlu0 %v2747_v58, %s2506_s21  ;;  %s2514_s30 = smov 119  }
 0x20c   : > { %1182 = vrot.lane.b32.xlu2 %v2747_v58, %s2496_s29  ;;  %s2515_s29 = smov 55  }
 0x213   : > { %1139 = vrot.lane.b32.xlu1 %v2747_v58, %s2510_s4  ;;  %1161 = vrot.lane.b32.xlu0 %v2747_v58, %s2508_s25 }
 0x214   : > { %1145 = vrot.lane.b32.xlu2 %v2747_v58, %s2507_s24 }
 0x21b   : > { %1102 = vrot.lane.b32.xlu1 %v2747_v58, %s2512_s18  ;;  %1123 = vrot.lane.b32.xlu0 %v2747_v58, %s2511_s8 }
 0x21c   : > { %1117 = vrot.lane.b32.xlu2 %v2747_v58, %s2509_s27 }
 0x223   : > { %1248 = vrot.lane.b32.xlu1 %v2747_v58, %s2514_s30  ;;  %1096 = vrot.lane.b32.xlu0 %v2747_v58, %s2513_s22 }
 0x224   : > { %1254 = vrot.lane.b32.xlu2 %v2747_v58, %s2515_s29 }
 0x22b   : > { %1252 = vrot.lane.b32.xlu1 %v2724_v47, %s2515_s29  ;;  %1246 = vrot.lane.b32.xlu0 %v2724_v47, %s2514_s30 }
 0x22c   : > { %1272 = vperm.xlu2 %2362, %v1269_v59  }
 0x233   : > { %1712 = vperm.xlu1 %2361, %v1708_v60   ;;  %v2371_v60 = vld [vmem:[%s2953_s7 + $0x8] ss:$0 sm:$0xff] }
 0x234   : > { %2069 = vperm.xlu2 %2362, %v2066_v61  }
 0x236   : > { %v1225_v62 = vpop.permute.xlu2 %1224 }
 0x23e   : > { %v1187_v63 = vpop.permute.xlu2 %1186 }
 0x246   : > { %v1160_v2 = vpop.permute.xlu2 %1159 }
 0x24d   : > { %v1209_v0 = vpop.permute.xlu1 %1208  ;;  %v1231_v1 = vpop.permute.xlu0 %1230 }
 0x24e   : > { %v2787_v5 = vpop.permute.xlu2 %1121  ;;  %v1237_v18 = vsel %vm1236_vm9, %v1225_v62, %v1231_v1  ;;  %v2370_v62 = vld [vmem:[%s2953_s7] ss:$0 sm:$0xff] }
 0x24f   : > { %v1244_v23 = vmul.f32 %v2364_v15, %v1237_v18  ;;  %v1361_v18 = vld [vmem:[#allocation4 + $0x68] sm:$0xff] }
 0x250   : > { %1374 = vmatpush.msrb.mxu0 %v1361_v18  ;;  %v1802_v18 = vld [vmem:[#allocation6 + $0xe0] sm:$0xff] }
 0x255   : > { %v1181_v3 = vpop.permute.xlu1 %1180  ;;  %v1203_v4 = vpop.permute.xlu0 %1202 }
 0x256   : > { %v2789_v8 = vpop.permute.xlu2 %1094  ;;  %v1215_v25 = vsel %vm1214_vm10, %v1203_v4, %v1209_v0  ;;  %v1193_v31 = vsel %vm1192_vm11, %v1181_v3, %v1187_v63 }
 0x257   : > { %v1222_v28 = vmul.f32 %v2366_v24, %v1215_v25  ;;  %v1200_v35 = vmul.f32 %v2365_v27, %v1193_v31  ;;  %v1326_v25 = vld [vmem:[#allocation4 + $0x18] sm:$0xff]  ;;  %v1388_v31 = vld [vmem:[#allocation4 + $0x90] sm:$0xff] }
 0x25d   : > { %v1144_v6 = vpop.permute.xlu1 %1143  ;;  %v1166_v7 = vpop.permute.xlu0 %1165 }
 0x25e   : > { %v1211_v11 = vpop.permute.xlu2 %1210  ;;  %v1171_v41 = vsel %vm610_vm4, %v1160_v2, %v1166_v7  ;;  %v1277_v7 = vld.sshfl [vmem:[#allocation1] sm:$0xff pattern:$0x75316420] }
 0x25f   : > { %v1178_v48 = vmul.f32 %v2367_v36, %v1171_v41 }
 0x265   : > { %v2791_v9 = vpop.permute.xlu1 %1115  ;;  %v1138_v10 = vpop.permute.xlu0 %1137 }
 0x266   : > { %v1183_v19 = vpop.permute.xlu2 %1182  ;;  %v1150_v50 = vsel %vm1149_vm12, %v1138_v10, %v1144_v6  ;;  %v1128_v56 = vsel %vm1127_vm13, %v2791_v9, %v2787_v5  ;;  %v1423_v9 = vld [vmem:[#allocation4 + $0xf8] sm:$0xff]  ;;  %v1422_v10 = vld [vmem:[#allocation4 + $0xf0] sm:$0xff] }
 0x267   : > { %v1135_v59 = vmul.f32 %v2368_v53, %v1128_v56  ;;  %v1446_v56 = vld [vmem:[%s2955_s9 + $0x8] sm:$0xff] }
 0x26d   : > { %v1233_v12 = vpop.permute.xlu1 %1232  ;;  %v2793_v13 = vpop.permute.xlu0 %1100 }
 0x26e   : > { %v1146_v34 = vpop.permute.xlu2 %1145  ;;  %v1107_v1 = vsel %vm1106_vm14, %v2789_v8, %v2793_v13  ;;  %v1278_v8 = vld.sshfl [vmem:[#allocation1 + $0x8] sm:$0xff pattern:$0x75316420]  ;;  %v1330_v13 = vld [vmem:[#allocation4 + $0x38] sm:$0xff] }
 0x26f   : > { %v1113_v6 = vmul.f32 %v2370_v62, %v1107_v1  ;;  %v2262_v1 = vld [vmem:[%s2957_s11 + $0x20] sm:$0xff] }
 0x275   : > { %v1205_v16 = vpop.permute.xlu1 %1204  ;;  %v1227_v17 = vpop.permute.xlu0 %1226 }
 0x276   : > { %v1238_v20 = vsel %vm1236_vm9, %v1227_v17, %v1233_v12  ;;  %v1216_v22 = vsel %vm1214_vm10, %v1205_v16, %v1211_v11  ;;  %v1118_v51 = vpop.permute.xlu2 %1117  ;;  %v1329_v16 = vld [vmem:[#allocation4 + $0x30] sm:$0xff]  ;;  %v1328_v17 = vld [vmem:[#allocation4 + $0x28] sm:$0xff]  ;;  %vm2115_vm10 = vcmask 1041408  }
 0x277   : > { %v1245_v21 = vmul.f32 %v2364_v15, %v1238_v20  ;;  %v1223_v26 = vmul.f32 %v2366_v24, %v1216_v22  ;;  %v1421_v20 = vld [vmem:[#allocation4 + $0xe8] sm:$0xff]  ;;  %v1360_v22 = vld [vmem:[#allocation4 + $0x60] sm:$0xff] }
 0x278   : > { %v1420_v24 = vld [vmem:[#allocation4 + $0xe0] sm:$0xff]  ;;  %1375 = vmatpush.msrb.mxu0 %v1360_v22 }
 0x279   : > { %1282 = vmatpush.msra.mxu2 %v1245_v21  ;;  %v1327_v21 = vld [vmem:[#allocation4 + $0x20] sm:$0xff] }
 0x27a   : > { %v1794_v22 = vld [vmem:[#allocation6 + $0xa0] sm:$0xff] }
 0x27b   : > { %1283 = vmatpush.msra.mxu2 %v1244_v23  ;;  %v1390_v23 = vld [vmem:[#allocation4 + $0xa0] sm:$0xff] }
 0x27d   : > { %v1168_v29 = vpop.permute.xlu1 %1167  ;;  %v1189_v30 = vpop.permute.xlu0 %1188  ;;  %1284 = vmatpush.msra.mxu2 %v1223_v26  ;;  %v1359_v26 = vld [vmem:[#allocation4 + $0x58] sm:$0xff] }
 0x27e   : > { %v1194_v32 = vsel %vm1192_vm11, %v1183_v19, %v1189_v30  ;;  %v1255_v61 = vpop.permute.xlu2 %1254  ;;  %v1391_v19 = vld [vmem:[#allocation4 + $0xa8] sm:$0xff]  ;;  %1376 = vmatpush.msrb.mxu0 %v1359_v26  ;;  %v1358_v30 = vld [vmem:[#allocation4 + $0x50] sm:$0xff] }
 0x27f   : > { %v1201_v33 = vmul.f32 %v2365_v27, %v1194_v32  ;;  %1285 = vmatpush.msra.mxu2 %v1222_v28  ;;  %1404 = vmatpush.msrb.mxu1 %v1391_v19  ;;  %v1389_v27 = vld [vmem:[#allocation4 + $0x98] sm:$0xff]  ;;  %v1418_v32 = vld [vmem:[#allocation4 + $0xd0] sm:$0xff] }
 0x280   : > { %v1419_v28 = vld [vmem:[#allocation4 + $0xd8] sm:$0xff]  ;;  %1377 = vmatpush.msrb.mxu0 %v1358_v30  ;;  %v1800_v19 = vld [vmem:[#allocation6 + $0xd0] sm:$0xff] }
 0x281   : > { %1286 = vmatpush.msra.mxu2 %v1201_v33  ;;  %1405 = vmatpush.msrb.mxu1 %v1390_v23  ;;  %v1324_v33 = vld [vmem:[#allocation4 + $0x8] sm:$0xff]  ;;  %v1792_v23 = vld [vmem:[#allocation6 + $0x90] sm:$0xff] }
 0x283   : > { %1287 = vmatpush.msra.mxu2 %v1200_v35  ;;  %1406 = vmatpush.msrb.mxu1 %v1389_v27  ;;  %v1387_v35 = vld [vmem:[#allocation4 + $0x88] sm:$0xff] }
 0x285   : > { %v1140_v37 = vpop.permute.xlu1 %1139  ;;  %v1162_v38 = vpop.permute.xlu0 %1161  ;;  %1288 = vmatpush.msra.mxu2 %v2747_v58  ;;  %1407 = vmatpush.msrb.mxu1 %v1388_v31  ;;  %v1805_v31 = vld [vmem:[#allocation6 + $0xf8] sm:$0xff] }
 0x286   : > { %v1172_v42 = vsel %vm610_vm4, %v1162_v38, %v1168_v29  ;;  %v1151_v46 = vsel %vm1149_vm12, %v1140_v37, %v1146_v34  ;;  %v1325_v29 = vld [vmem:[#allocation4 + $0x10] sm:$0xff]  ;;  %v1357_v34 = vld [vmem:[#allocation4 + $0x48] sm:$0xff]  ;;  %v1323_v37 = vld [vmem:[#allocation4] sm:$0xff] }
 0x287   : > { %v1179_v44 = vmul.f32 %v2367_v36, %v1172_v42  ;;  %1289 = vmatpush.msra.mxu2 %v2724_v47  ;;  %v1158_v52 = vmul.f32 %v2369_v49, %v1151_v46  ;;  %v1157_v47 = vmul.f32 %v2369_v49, %v1150_v50  ;;  %1378 = vmatpush.msrb.mxu0 %v1357_v34  ;;  %v1417_v36 = vld [vmem:[#allocation4 + $0xc8] sm:$0xff]  ;;  %v1356_v38 = vld [vmem:[#allocation4 + $0x40] sm:$0xff]  ;;  %v1273_v42 = vpop.permute.xlu2 %1272 }
 0x288   : > { %1408 = vmatpush.msrb.mxu1 %v1387_v35 }
 0x289   : > { %1290 = vmatpush.msra.mxu2 %v1179_v44  ;;  %1379 = vmatpush.msrb.mxu0 %v1356_v38 }
 0x28a   : > { %1409 = vmatpush.msrb.mxu1 %v1386_v39 }
 0x28b   : > { %1291 = vmatpush.msra.mxu2 %v1178_v48  ;;  %v1482_v48 = vld [vmem:[%s2957_s11 + $0x8] sm:$0xff] }
 0x28d   : > { %v1103_v54 = vpop.permute.xlu1 %1102  ;;  %v1124_v55 = vpop.permute.xlu0 %1123  ;;  %1292 = vmatpush.msra.mxu2 %v1158_v52 }
 0x28e   : > { %v1129_v57 = vsel %vm1127_vm13, %v1118_v51, %v1124_v55  ;;  %v1445_v55 = vld [vmem:[%s2955_s9] sm:$0xff] }
 0x28f   : > { %v1136_v58 = vmul.f32 %v2368_v53, %v1129_v57  ;;  %1293 = vmatpush.msra.mxu2 %v1157_v47  ;;  %v2246_v57 = vld [vmem:[%s2955_s9 + $0x10] sm:$0xff] }
 0x291   : > { %1294 = vmatpush.msra.mxu2 %v1136_v58  ;;  %v2252_v58 = vld [vmem:[%s2957_s11 + $0x18] sm:$0xff] }
 0x293   : > { %1295 = vmatpush.msra.mxu2 %v1135_v59  ;;  %v2251_v59 = vld [vmem:[%s2957_s11 + $0x10] sm:$0xff] }
 0x295   : > { %v1249_v63 = vpop.permute.xlu1 %1248  ;;  %v1097_v0 = vpop.permute.xlu0 %1096 }
 0x296   : > { %v1260_v2 = vsel %vm1258_vm15, %v1249_v63, %v1255_v61  ;;  %v1108_v3 = vsel %vm1106_vm14, %v1097_v0, %v1103_v54  ;;  %v2257_v61 = vld [vmem:[%s2955_s9 + $0x20] sm:$0xff]  ;;  %v2263_v0 = vld [vmem:[%s2957_s11 + $0x28] sm:$0xff] }
 0x297   : > { %v1267_v4 = vmul.f32 %v2371_v60, %v1260_v2  ;;  %v1114_v5 = vmul.f32 %v2370_v62, %v1108_v3  ;;  %v2258_v62 = vld [vmem:[%s2955_s9 + $0x28] sm:$0xff]  ;;  %v1481_v63 = vld [vmem:[%s2957_s11] sm:$0xff] }
 0x299   : > { %1296 = vmatpush.msra.mxu2 %v1114_v5  ;;  %1316 = vmatpush.msra.mxu3 %v1267_v4 }
 0x29b   : > { %1297 = vmatpush.msra.mxu2 %v1113_v6 }
 0x29c   : > { %1298 = vmatmul.f32.vlgmr.msra.gmra.mxu2 %v1277_v7  ;;  %v2266_v7 = vld [vmem:[%s2955_s9 + $0x30] sm:$0xff] }
 0x29d   : > { %v1253_v11 = vpop.permute.xlu1 %1252  ;;  %v1247_v12 = vpop.permute.xlu0 %1246  ;;  %1432 = vmatpush.msrb.mxu2 %v1423_v9 }
 0x29e   : > { %v1259_v14 = vsel %vm1258_vm15, %v1247_v12, %v1253_v11  ;;  %v2272_v11 = vld [vmem:[%s2957_s11 + $0x38] sm:$0xff]  ;;  %v2271_v12 = vld [vmem:[%s2957_s11 + $0x30] sm:$0xff] }
 0x29f   : > { %v1266_v15 = vmul.f32 %v2371_v60, %v1259_v14  ;;  %1433 = vmatpush.msrb.mxu2 %v1422_v10  ;;  %v2247_v60 = vld [vmem:[%s2955_s9 + $0x18] sm:$0xff]  ;;  %v1709_v14 = vld [vmem:[%s2956_s10 + $0x8] sm:$0xff] }
 0x2a0   : > { %v2267_v10 = vld [vmem:[%s2955_s9 + $0x38] sm:$0xff]  ;;  %1717 = vperm.xlu0 %2363, %v1709_v14  }
 0x2a1   : > { %1317 = vmatpush.msra.mxu3 %v1266_v15  ;;  %1434 = vmatpush.msrb.mxu2 %v1421_v20  ;;  %v1798_v20 = vld [vmem:[#allocation6 + $0xc0] sm:$0xff] }
 0x2a2   : > { %2238 = vmatmul.msk.f32.vlgmr.msra.gmra.mxu3 %vm572_vm6, %v1278_v8 }
 0x2a3   : > { %1343 = vmatpush.msrb.mxu3 %v1330_v13  ;;  %1435 = vmatpush.msrb.mxu2 %v1420_v24  ;;  %v1790_v24 = vld [vmem:[#allocation6 + $0x80] sm:$0xff] }
 0x2a5   : > { %1344 = vmatpush.msrb.mxu3 %v1329_v16  ;;  %1436 = vmatpush.msrb.mxu2 %v1419_v28  ;;  %v1713_v39 = vpop.permute.xlu1 %1712 }
 0x2a7   : > { %1345 = vmatpush.msrb.mxu3 %v1328_v17  ;;  %1437 = vmatpush.msrb.mxu2 %v1418_v32  ;;  %v1804_v17 = vld [vmem:[#allocation6 + $0xf0] sm:$0xff] }
 0x2a9   : > { %1346 = vmatpush.msrb.mxu3 %v1327_v21  ;;  %1438 = vmatpush.msrb.mxu2 %v1417_v36  ;;  %v1796_v21 = vld [vmem:[#allocation6 + $0xb0] sm:$0xff] }
 0x2ab   : > { %1347 = vmatpush.msrb.mxu3 %v1326_v25  ;;  %1439 = vmatpush.msrb.mxu2 %v1416_v40 }
 0x2ad   : > { %1348 = vmatpush.msrb.mxu3 %v1325_v29  ;;  %1567 = vmatpush.msra.mxu2 %v1482_v48  ;;  %v1760_v48 = vld [vmem:[#allocation6 + $0x60] sm:$0xff] }
 0x2af   : > { %1349 = vmatpush.msrb.mxu3 %v1324_v33  ;;  %1568 = vmatpush.msra.mxu2 %v1481_v63  ;;  %v1757_v63 = vld [vmem:[#allocation6 + $0x48] sm:$0xff] }
 0x2b1   : > { %1350 = vmatpush.msrb.mxu3 %v1323_v37 }
 0x312   : > { %v1718_v37 = vpop.permute.xlu0 %1717 }
 0x31f   : > { %v1299_v41 = vpop.f32.mrf.mxu2 }
 0x320   : > { %v1300_v43 = vadd.f32 %v1299_v41, %v1273_v42 }
 0x325   : > { %v1319_v44 = vpop.f32.mrf.mxu3 }
 0x326   : > { %v1320_v45 = vadd.f32 %v1319_v44, %v1300_v43  ;;  %v1724_v44 = vld [vmem:[%s2958_s12] sm:$0x3] }
 0x328   : > { %v1322_v46 = vmax.f32 %v1320_v45, 0.0  ;;  %v2276_v45 = vld [vmem:[%s2958_s12 + $0x2] sm:$0x3] }
 0x32a   : > { %2239 = vmatmul.msk.f32.vlgmr.msrb.gmra.mxu3 %vm1331_vm0, %v1322_v46  ;;  %2240 = vmatmul.msk.f32.vlgmr.msrb.gmra.mxu0 %vm1331_vm0, %v1322_v46 }
 0x32b   : > { %2241 = vmatmul.msk.f32.vlgmr.msrb.gmra.mxu1 %vm1331_vm0, %v1322_v46  ;;  %2242 = vmatmul.msk.f32.vlgmr.msrb.gmra.mxu2 %vm1331_vm0, %v1322_v46  ;;  %v1762_v46 = vld [vmem:[#allocation6 + $0x70] sm:$0xff] }
 0x32c   : > { %1697 = vmatpush.msrb.mxu2 %v2272_v11  ;;  %v1930_v11 = vld [vmem:[#allocation6 + $0x160] sm:$0xff] }
 0x32e   : > { %1698 = vmatpush.msrb.mxu2 %v2271_v12  ;;  %v1928_v12 = vld [vmem:[#allocation6 + $0x150] sm:$0xff] }
 0x3a7   : > { %v1381_v49 = vpop.f32.mrf.mxu0 }
 0x3a8   : > { %v1411_v52 = vpop.f32.mrf.mxu1 }
 0x3ad   : > { %v1352_v50 = vpop.f32.mrf.mxu3 }
 0x3ae   : > { %v1384_v51 = vmax.f32 %v1352_v50, %v1381_v49  ;;  %v1441_v47 = vpop.f32.mrf.mxu2  ;;  %v1758_v49 = vld [vmem:[#allocation6 + $0x50] sm:$0xff]  ;;  %v1756_v50 = vld [vmem:[#allocation6 + $0x40] sm:$0xff] }
 0x3b0   : > { %v1414_v53 = vmax.f32 %v1384_v51, %v1411_v52  ;;  %v1754_v51 = vld [vmem:[#allocation6 + $0x30] sm:$0xff]  ;;  %v1752_v52 = vld [vmem:[#allocation6 + $0x20] sm:$0xff] }
 0x3b2   : > { %v1444_v54 = vmax.f32 %v1414_v53, %v1441_v47  ;;  %v1750_v53 = vld [vmem:[#allocation6 + $0x10] sm:$0xff]  ;;  %v1748_v47 = vld [vmem:[#allocation6] sm:$0xff] }
 0x3b4   : > { %2243 = vmatpush.msk.msra.mxu1 %vm1454_vm1, %v1444_v54  ;;  %2294 = vmatpush.msk.msra.mxu3 %vm1454_vm1, %v1444_v54 }
 0x3b5   : > { %2248 = vmatpush.msk.msra.mxu0 %vm1454_vm1, %v1444_v54  ;;  %2244 = vmatmul.msk.f32.vlgmr.msra.gmra.mxu1 %vm1447_vm2, %v1445_v55  ;;  %v1801_v55 = vld [vmem:[#allocation6 + $0xd8] sm:$0xff] }
 0x3b6   : > { %2245 = vmatmul.msk.f32.vlgmr.msra.gmra.mxu3 %vm1447_vm2, %v1446_v56  ;;  %2249 = vmatmul.msk.f32.vlgmr.msra.gmra.mxu0 %vm1447_vm2, %v2246_v57  ;;  %v1799_v56 = vld [vmem:[#allocation6 + $0xc8] sm:$0xff]  ;;  %v1763_v57 = vld [vmem:[#allocation6 + $0x78] sm:$0xff] }
 0x3b7   : > { %1538 = vmatpush.msrb.mxu1 %v2252_v58  ;;  %2259 = vmatpush.msk.msrb.mxu3 %vm1454_vm1, %v1444_v54  ;;  %v1797_v58 = vld [vmem:[#allocation6 + $0xb8] sm:$0xff] }
 0x3b8   : > { %1631 = vmatpush.msrb.mxu0 %v2263_v0  ;;  %v1791_v0 = vld [vmem:[#allocation6 + $0x88] sm:$0xff] }
 0x3b9   : > { %1539 = vmatpush.msrb.mxu1 %v2251_v59  ;;  %v1761_v59 = vld [vmem:[#allocation6 + $0x68] sm:$0xff] }
 0x3ba   : > { %1632 = vmatpush.msrb.mxu0 %v2262_v1  ;;  %v1755_v1 = vld [vmem:[#allocation6 + $0x38] sm:$0xff] }
 0x3bb   : > { %2268 = vmatpush.msk.msra.mxu1 %vm1454_vm1, %v1444_v54  ;;  %v1803_v54 = vld [vmem:[#allocation6 + $0xe8] sm:$0xff] }
 0x3be   : > { %2250 = vmatmul.msk.f32.gmra.mxu0 %vm1447_vm2, %v2247_v60  ;;  %2260 = vmatmul.msk.f32.vlgmr.msrb.gmra.mxu3 %vm1447_vm2, %v2257_v61  ;;  %v1795_v60 = vld [vmem:[#allocation6 + $0xa8] sm:$0xff]  ;;  %v1759_v61 = vld [vmem:[#allocation6 + $0x58] sm:$0xff] }
 0x3c6   : > { %2261 = vmatmul.msk.f32.gmra.mxu3 %vm1447_vm2, %v2258_v62  ;;  %v1793_v62 = vld [vmem:[#allocation6 + $0x98] sm:$0xff] }
 0x432   : > { %v1475_v2 = vpop.f32.mrf.mxu1 }
 0x433   : > { %v1509_v3 = vpop.f32.mrf.mxu0  ;;  %2255 = vmatmul.msk.f32.vlgmr.msra.gmra.mxu2 %vm572_vm6, %v1475_v2  ;;  %v1753_v2 = vld [vmem:[#allocation6 + $0x28] sm:$0xff] }
 0x434   : > { %2253 = vmatmul.msk.f32.vlgmr.msrb.gmra.mxu1 %vm572_vm6, %v1509_v3  ;;  %1837 = vmatpush.msra.mxu2 %v1805_v31  ;;  %v1751_v3 = vld [vmem:[#allocation6 + $0x18] sm:$0xff]  ;;  %v2013_v31 = vld [vmem:[#allocation6 + $0x1c0] sm:$0xff] }
 0x435   : > { %1817 = vmatpush.msrb.mxu1 %v1804_v17  ;;  %v1924_v17 = vld [vmem:[#allocation6 + $0x130] sm:$0xff] }
 0x436   : > { %1838 = vmatpush.msra.mxu2 %v1803_v54 }
 0x437   : > { %1818 = vmatpush.msrb.mxu1 %v1802_v18  ;;  %v1925_v18 = vld [vmem:[#allocation6 + $0x138] sm:$0xff] }
 0x438   : > { %1839 = vmatpush.msra.mxu2 %v1801_v55 }
 0x439   : > { %v1478_v4 = vpop.f32.mrf.mxu3  ;;  %1819 = vmatpush.msrb.mxu1 %v1800_v19  ;;  %v1922_v19 = vld [vmem:[#allocation6 + $0x120] sm:$0xff] }
 0x43a   : > { %1840 = vmatpush.msra.mxu2 %v1799_v56 }
 0x43b   : > { %v1512_v5 = vpop.f32.mrf.mxu0  ;;  %2256 = vmatmul.msk.f32.gmra.mxu2 %vm572_vm6, %v1478_v4  ;;  %1820 = vmatpush.msrb.mxu1 %v1798_v20  ;;  %v1749_v4 = vld [vmem:[#allocation6 + $0x8] sm:$0xff] }
 0x43c   : > { %2254 = vmatmul.msk.f32.gmra.mxu1 %vm572_vm6, %v1512_v5  ;;  %1841 = vmatpush.msra.mxu2 %v1797_v58  ;;  %v1933_v5 = vld [vmem:[#allocation6 + $0x178] sm:$0xff]  ;;  %v1923_v20 = vld [vmem:[#allocation6 + $0x128] sm:$0xff] }
 0x43d   : > { %1821 = vmatpush.msrb.mxu1 %v1796_v21  ;;  %v2019_v21 = vld [vmem:[#allocation6 + $0x1f0] sm:$0xff] }
 0x43e   : > { %1842 = vmatpush.msra.mxu2 %v1795_v60 }
 0x43f   : > { %1822 = vmatpush.msrb.mxu1 %v1794_v22  ;;  %v2020_v22 = vld [vmem:[#allocation6 + $0x1f8] sm:$0xff] }
 0x440   : > { %1843 = vmatpush.msra.mxu2 %v1793_v62 }
 0x441   : > { %v1602_v6 = vpop.f32.mrf.mxu3  ;;  %1823 = vmatpush.msrb.mxu1 %v1792_v23  ;;  %v1920_v23 = vld [vmem:[#allocation6 + $0x110] sm:$0xff] }
 0x442   : > { %2264 = vmatmul.msk.f32.vlgmr.msrb.gmra.mxu0 %vm572_vm6, %v1602_v6  ;;  %1844 = vmatpush.msra.mxu2 %v1791_v0  ;;  %v1931_v6 = vld [vmem:[#allocation6 + $0x168] sm:$0xff] }
 0x443   : > { %1824 = vmatpush.msrb.mxu1 %v1790_v24  ;;  %v1921_v24 = vld [vmem:[#allocation6 + $0x118] sm:$0xff] }
 0x444   : > { %2269 = vmatmul.msk.f32.vlgmr.msra.gmra.mxu1 %vm1447_vm2, %v2266_v7  ;;  %v1929_v7 = vld [vmem:[#allocation6 + $0x158] sm:$0xff] }
 0x449   : > { %v1605_v9 = vpop.f32.mrf.mxu3 }
 0x44a   : > { %2265 = vmatmul.msk.f32.gmra.mxu0 %vm572_vm6, %v1605_v9  ;;  %v1932_v9 = vld [vmem:[#allocation6 + $0x170] sm:$0xff] }
 0x44c   : > { %2270 = vmatmul.msk.f32.gmra.mxu1 %vm1447_vm2, %v2267_v10 }
 0x4b1   : > { %v1541_v15 = vpop.f32.mrf.mxu1 }
 0x4b6   : > { %v1570_v25 = vpop.f32.mrf.mxu2 }
 0x4b7   : > { %v1571_v29 = vadd.f32 %v1570_v25, %v1541_v15  ;;  %v2282_v15 = vld [vmem:[%s2958_s12 + $0x4] sm:$0x3]  ;;  %v1918_v25 = vld [vmem:[#allocation6 + $0x100] sm:$0xff] }
 0x4b9   : > { %v1544_v8 = vpop.f32.mrf.mxu1 }
 0x4be   : > { %v1573_v26 = vpop.f32.mrf.mxu2 }
 0x4bf   : > { %v1634_v27 = vpop.f32.mrf.mxu0  ;;  %v1574_v32 = vadd.f32 %v1573_v26, %v1544_v8  ;;  %v2286_v8 = vld [vmem:[%s2958_s12 + $0x6] sm:$0x3]  ;;  %v1919_v26 = vld [vmem:[#allocation6 + $0x108] sm:$0xff] }
 0x4c0   : > { %v1640_v33 = vadd.f32 %v1634_v27, %v1571_v29  ;;  %v2017_v27 = vld [vmem:[#allocation6 + $0x1e0] sm:$0xff]  ;;  %v2015_v29 = vld [vmem:[#allocation6 + $0x1d0] sm:$0xff] }
 0x4c1   : > { %v1668_v13 = vpop.f32.mrf.mxu1 }
 0x4c2   : > { %2273 = vmatmul.msk.f32.vlgmr.msrb.gmra.mxu2 %vm572_vm6, %v1668_v13  ;;  %v1926_v13 = vld [vmem:[#allocation6 + $0x140] sm:$0xff] }
 0x4c3   : > { %1965 = vmatpush.msrb.mxu2 %v1933_v5 }
 0x4c5   : > { %1966 = vmatpush.msrb.mxu2 %v1931_v6 }
 0x4c7   : > { %v1637_v30 = vpop.f32.mrf.mxu0  ;;  %1967 = vmatpush.msrb.mxu2 %v1929_v7 }
 0x4c8   : > { %v1641_v34 = vadd.f32 %v1637_v30, %v1574_v32  ;;  %v2016_v30 = vld [vmem:[#allocation6 + $0x1d8] sm:$0xff]  ;;  %v2014_v32 = vld [vmem:[#allocation6 + $0x1c8] sm:$0xff] }
 0x4c9   : > { %v1671_v16 = vpop.f32.mrf.mxu1 }
 0x4ca   : > { %2274 = vmatmul.msk.f32.gmra.mxu2 %vm572_vm6, %v1671_v16  ;;  %v1927_v16 = vld [vmem:[#allocation6 + $0x148] sm:$0xff] }
 0x4cb   : > { %1968 = vmatpush.msrb.mxu2 %v1927_v16 }
 0x4cd   : > { %1969 = vmatpush.msrb.mxu2 %v1925_v18 }
 0x4cf   : > { %1970 = vmatpush.msrb.mxu2 %v1923_v20 }
 0x4d1   : > { %1971 = vmatpush.msrb.mxu2 %v1921_v24 }
 0x4d3   : > { %1972 = vmatpush.msrb.mxu2 %v1919_v26 }
 0x545   : > { %v1700_v28 = vpop.f32.mrf.mxu2 }
 0x546   : > { %v1706_v35 = vadd.f32 %v1700_v28, %v1640_v33  ;;  %v2018_v28 = vld [vmem:[#allocation6 + $0x1e8] sm:$0xff]  ;;  %v2011_v33 = vld [vmem:[#allocation6 + $0x1b0] sm:$0xff] }
 0x548   : > { %v1720_v40 = vadd.f32 %v1713_v39, %v1706_v35  ;;  %v2009_v35 = vld [vmem:[#allocation6 + $0x1a0] sm:$0xff] }
 0x549   : > { %v2005_v39 = vld [vmem:[#allocation6 + $0x180] sm:$0xff] }
 0x54a   : > { %v1722_v43 = vmax.f32 %v1720_v40, 0.0  ;;  %v2006_v40 = vld [vmem:[#allocation6 + $0x188] sm:$0xff] }
 0x54d   : > { %v1703_v36 = vpop.f32.mrf.mxu2 }
 0x54e   : > { %v1707_v38 = vadd.f32 %v1703_v36, %v1641_v34  ;;  %v2012_v34 = vld [vmem:[#allocation6 + $0x1b8] sm:$0xff]  ;;  %v2010_v36 = vld [vmem:[#allocation6 + $0x1a8] sm:$0xff] }
 0x550   : > { %v1721_v41 = vadd.f32 %v1718_v37, %v1707_v38  ;;  %v2007_v37 = vld [vmem:[#allocation6 + $0x190] sm:$0xff]  ;;  %v2008_v38 = vld [vmem:[#allocation6 + $0x198] sm:$0xff] }
 0x552   : > { %v1723_v42 = vmax.f32 %v1721_v41, 0.0 }
 0x554   : > { %1742 = vmatpush.msra.mxu3 %v1723_v42  ;;  %1783 = vmatpush.msra.mxu0 %v1723_v42 }
 0x555   : > { %1911 = vmatpush.msra.mxu1 %v1723_v42 }
 0x556   : > { %1743 = vmatpush.msra.mxu3 %v1722_v43  ;;  %1784 = vmatpush.msra.mxu0 %v1722_v43 }
 0x557   : > { %1912 = vmatpush.msra.mxu1 %v1722_v43  ;;  %2275 = vmatmul.msk.f32.vlgmr.msra.gmra.mxu3 %vm572_vm6, %v1724_v44 }
 0x558   : > { %2277 = vmatmul.msk.f32.vlgmr.msra.gmra.mxu0 %vm572_vm6, %v2276_v45  ;;  %1860 = vmatpush.msrb.mxu3 %v1762_v46 }
 0x559   : > { %1880 = vmatpush.msrb.mxu0 %v1763_v57 }
 0x55a   : > { %1861 = vmatpush.msrb.mxu3 %v1760_v48 }
 0x55b   : > { %1881 = vmatpush.msrb.mxu0 %v1761_v59 }
 0x55c   : > { %1862 = vmatpush.msrb.mxu3 %v1758_v49 }
 0x55d   : > { %1882 = vmatpush.msrb.mxu0 %v1759_v61 }
 0x55e   : > { %1863 = vmatpush.msrb.mxu3 %v1756_v50 }
 0x55f   : > { %1883 = vmatpush.msrb.mxu0 %v1757_v63 }
 0x560   : > { %1864 = vmatpush.msrb.mxu3 %v1754_v51 }
 0x561   : > { %1884 = vmatpush.msrb.mxu0 %v1755_v1 }
 0x562   : > { %1865 = vmatpush.msrb.mxu3 %v1752_v52 }
 0x563   : > { %1885 = vmatpush.msrb.mxu0 %v1753_v2 }
 0x564   : > { %1866 = vmatpush.msrb.mxu3 %v1750_v53  ;;  %v2070_v53 = vpop.permute.xlu2 %2069 }
 0x565   : > { %1886 = vmatpush.msrb.mxu0 %v1751_v3 }
 0x566   : > { %1867 = vmatpush.msrb.mxu3 %v1748_v47 }
 0x567   : > { %1887 = vmatpush.msrb.mxu0 %v1749_v4 }
 0x568   : > { %1998 = vmatpush.msra.mxu3 %v1723_v42 }
 0x569   : > { %2032 = vmatpush.msra.mxu0 %v2019_v21 }
 0x56a   : > { %1999 = vmatpush.msra.mxu3 %v1722_v43 }
 0x56b   : > { %2033 = vmatpush.msra.mxu0 %v2017_v27 }
 0x56d   : > { %2034 = vmatpush.msra.mxu0 %v2015_v29 }
 0x56f   : > { %2035 = vmatpush.msra.mxu0 %v2013_v31 }
 0x571   : > { %2036 = vmatpush.msra.mxu0 %v2011_v33 }
 0x573   : > { %2037 = vmatpush.msra.mxu0 %v2009_v35 }
 0x575   : > { %2038 = vmatpush.msra.mxu0 %v2007_v37 }
 0x577   : > { %2039 = vmatpush.msra.mxu0 %v2005_v39 }
 0x5d5   : > { %v1786_v10 = vpop.f32.mrf.mxu0 }
 0x5d6   : > { %2278 = vmatmul.msk.f32.vlgmr.msrb.gmra.mxu1 %vm1331_vm0, %v1786_v10  ;;  %2279 = vmatmul.msk.f32.vlgmr.msra.gmra.mxu2 %vm1331_vm0, %v1786_v10 }
 0x5d7   : > { %1945 = vmatpush.msrb.mxu1 %v1932_v9 }
 0x5d9   : > { %1946 = vmatpush.msrb.mxu1 %v1930_v11 }
 0x5da   : > { %v1745_v14 = vpop.f32.mrf.mxu3 }
 0x5db   : > { %2280 = vmatmul.msk.f32.vlgmr.msrb.gmra.mxu3 %vm1331_vm0, %v1745_v14  ;;  %2281 = vmatmul.msk.f32.vlgmr.msrb.gmra.mxu0 %vm1331_vm0, %v1745_v14 }
 0x5dc   : > { %1947 = vmatpush.msrb.mxu1 %v1928_v12  ;;  %2052 = vmatpush.msrb.mxu3 %v2020_v22 }
 0x5de   : > { %2283 = vmatmul.msk.f32.vlgmr.msra.gmra.mxu1 %vm572_vm6, %v2282_v15  ;;  %2053 = vmatpush.msrb.mxu3 %v2018_v28 }
 0x5df   : > { %1948 = vmatpush.msrb.mxu1 %v1926_v13 }
 0x5e0   : > { %2054 = vmatpush.msrb.mxu3 %v2016_v30 }
 0x5e1   : > { %1949 = vmatpush.msrb.mxu1 %v1924_v17 }
 0x5e2   : > { %2055 = vmatpush.msrb.mxu3 %v2014_v32 }
 0x5e3   : > { %2287 = vmatmul.msk.f32.vlgmr.msra.gmra.mxu3 %vm572_vm6, %v2286_v8  ;;  %1950 = vmatpush.msrb.mxu1 %v1922_v19 }
 0x5e4   : > { %2056 = vmatpush.msrb.mxu3 %v2012_v34 }
 0x5e5   : > { %1951 = vmatpush.msrb.mxu1 %v1920_v23 }
 0x5e6   : > { %2057 = vmatpush.msrb.mxu3 %v2010_v36 }
 0x5e7   : > { %1952 = vmatpush.msrb.mxu1 %v1918_v25 }
 0x5e8   : > { %2058 = vmatpush.msrb.mxu3 %v2008_v38 }
 0x5ea   : > { %2059 = vmatpush.msrb.mxu3 %v2006_v40 }
 0x653   : > { %v1826_v41 = vpop.f32.mrf.mxu1 }
 0x658   : > { %v1889_v46 = vpop.f32.mrf.mxu0 }
 0x659   : > { %v1846_v48 = vpop.f32.mrf.mxu2 }
 0x65a   : > { %v1890_v54 = vadd.f32 %v1889_v46, %v1846_v48 }
 0x65b   : > { %v1914_v42 = vpop.f32.mrf.mxu1 }
 0x65c   : > { %2284 = vmatmul.msk.f32.vlgmr.msrb.gmra.mxu1 %vm1331_vm0, %v1914_v42  ;;  %2285 = vmatmul.msk.f32.vlgmr.msrb.gmra.mxu2 %vm1331_vm0, %v1914_v42 }
 0x65e   : > { %v1869_v43 = vpop.f32.mrf.mxu3 }
 0x65f   : > { %v1870_v44 = vadd.f32 %v1869_v43, %v1826_v41 }
 0x666   : > { %v2001_v45 = vpop.f32.mrf.mxu3 }
 0x667   : > { %2288 = vmatmul.msk.f32.vlgmr.msra.gmra.mxu0 %vm1331_vm0, %v2001_v45  ;;  %2289 = vmatmul.msk.f32.vlgmr.msrb.gmra.mxu3 %vm1331_vm0, %v2001_v45 }
 0x6d9   : > { %v1954_v49 = vpop.f32.mrf.mxu1 }
 0x6da   : > { %v1977_v50 = vadd.f32 %v1954_v49, %v1870_v44 }
 0x6df   : > { %v1974_v47 = vpop.f32.mrf.mxu2 }
 0x6e0   : > { %v1978_v56 = vadd.f32 %v1974_v47, %v1890_v54 }
 0x6e4   : > { %v2041_v51 = vpop.f32.mrf.mxu0 }
 0x6e5   : > { %v2064_v52 = vadd.f32 %v2041_v51, %v1977_v50 }
 0x6e7   : > { %v2072_v55 = vadd.f32 %v2070_v53, %v2064_v52 }
 0x6e9   : > { %v2074_v57 = vsub.f32 0.0, %v2072_v55 }
 0x6ea   : > { %v2061_v58 = vpop.f32.mrf.mxu3 }
 0x6eb   : > { %v2076_v59 = vmul.f32 1.442695, %v2074_v57  ;;  %v2065_v60 = vadd.f32 %v2061_v58, %v1978_v56 }
 0x6ed   : > { %2372 = vpow2.f32 %v2076_v59  ;;  %v2073_v61 = vadd.f32 %v2070_v53, %v2065_v60 }
 0x6ef   : > { %v2075_v62 = vsub.f32 0.0, %v2073_v61 }
 0x6f1   : > { %v2078_v63 = vmul.f32 1.442695, %v2075_v62 }
 0x6f3   : > { %v2373_v0 = vpop.eup %2372  ;;  %2374 = vpow2.f32 %v2078_v63 }
 0x6f4   : > { %v2080_v1 = vadd.f32 1.0, %v2373_v0 }
 0x6f6   : > { %2376 = vrcp.f32 %v2080_v1  ;;  %vm2087_vm5 = vweird.f32 %v2080_v1  ;;  %v2093_v13 = vand.u32 2147483648, %v2080_v1  ;;  %v2091_v17 = vand.u32 2147483647, %v2080_v1 }
 0x6f8   : > { %v2094_v22 = vor.u32 1.1754944e-38, %v2093_v13  ;;  %vm2092_vm11 = vcmp.eq.f32.partialorder %v2091_v17, 8.507059e+37 }
 0x6f9   : > { %v2375_v2 = vpop.eup %2374 }
 0x6fa   : > { %v2081_v3 = vadd.f32 1.0, %v2375_v2 }
 0x6fc   : > { %v2377_v4 = vpop.eup %2376  ;;  %2378 = vrcp.f32 %v2081_v3  ;;  %v2108_v12 = vand.u32 2147483648, %v2081_v3  ;;  %v2106_v8 = vand.u32 2147483647, %v2081_v3  ;;  %vm2102_vm7 = vweird.f32 %v2081_v3 }
 0x6fd   : > { %v2083_v5 = vmul.f32 %v2377_v4, %v2080_v1  ;;  %vm2088_vm3 = vweird.f32 %v2377_v4 }
 0x6fe   : > { %vm2933_vm6 = vmor %vm2087_vm5, %vm2088_vm3  ;;  %v2109_v19 = vor.u32 1.1754944e-38, %v2108_v12  ;;  %vm2107_vm9 = vcmp.eq.f32.partialorder %v2106_v8, 8.507059e+37 }
 0x6ff   : > { %v2084_v6 = vsub.f32 1.0, %v2083_v5 }
 0x701   : > { %v2085_v9 = vmul.f32 %v2377_v4, %v2084_v6 }
 0x702   : > { %v2379_v7 = vpop.eup %2378 }
 0x703   : > { %v2098_v10 = vmul.f32 %v2379_v7, %v2081_v3  ;;  %v2086_v14 = vadd.f32 %v2377_v4, %v2085_v9  ;;  %vm2103_vm4 = vweird.f32 %v2379_v7 }
 0x704   : > { %vm2104_vm8 = vmor %vm2102_vm7, %vm2103_vm4 }
 0x705   : > { %v2099_v11 = vsub.f32 1.0, %v2098_v10  ;;  %v2090_v20 = vsel %vm2933_vm6, %v2377_v4, %v2086_v14 }
 0x706   : > { %v2095_v25 = vsel %vm2092_vm11, %v2094_v22, %v2090_v20 }
 0x707   : > { %v2100_v15 = vmul.f32 %v2379_v7, %v2099_v11 }
 0x709   : > { %v2101_v18 = vadd.f32 %v2379_v7, %v2100_v15 }
 0x70b   : > { %v2105_v21 = vsel %vm2104_vm8, %v2379_v7, %v2101_v18 }
 0x70c   : > { %v2110_v23 = vsel %vm2107_vm9, %v2109_v19, %v2105_v21 }
 0x70d   : > { %v2114_v24 = vrot.slane %v2110_v23, 6 }
 0x70f   : > { %v2116_v26 = vsel %vm2115_vm10, %v2095_v25, %v2114_v24 }
 0x710   : > { %2118 = vst [vmem:[%s544_s20] sm:$0xf] %v2116_v26 }
 0x711 PF: > { %s2972_s19 = sld [smem:[#allocation9_spill]] }
 0x717   : > { %s27_s18 = sadd.s32 1, %s2972_s19  }
 0x718   : > { %p24_p7 = scmp.ge.s32.totalorder %s27_s18, 4  }
 0x71a   :  { %26 = sbr.rel (!%p24_p7) target bundleno = 5 (0x5), region = 155 }
 0x71f   :  { %2140 = vsyncpa [#allocation3], 1 }
 0x720   :  { %2142 = vsyncpa [#allocation3 + $0x1], 1 }
 0x721   :  { %2143 = vsyncpa [#allocation5], 1 }

</bundles_post_ra>
